<compile_context>
chip_gen: v7x
topology: tpu7x:2x2x1
jax: 0.10.0
libtpu: 0.0.40
codegen_flags: <defaults>
</compile_context>

<pallas_src>
import functools

import jax
import jax.numpy as jnp
from jax.experimental import pallas as pl
from jax.experimental.pallas import tpu as pltpu


# ---------------------------------------------------------------------------
# Helpers: per-generation budget & tile choice
# ---------------------------------------------------------------------------
def _round_up(x, m):
    return -(-x // m) * m


def _cdiv(a, b):
    return -(-a // b)


@functools.lru_cache(maxsize=None)
def _tpu_budget():
    """Per-generation tile / VMEM budget (v7x-safe fallback if unknown)."""
    vmem = None
    try:
        info = pltpu.get_tpu_info()
        for name in ("vmem_capacity_bytes", "vmem_bytes", "vmem_size_bytes"):
            v = getattr(info, name, None)
            if isinstance(v, int) and v > 0:
                vmem = v
                break
    except Exception:
        pass
    if vmem is not None and vmem >= 100 * 1024 * 1024:      # v5e / v6e: 128 MiB
        return {"conv_tm": 1024, "fc_tm": 2048, "vmem_limit": 64 * 1024 * 1024}
    # v7x (64 MiB per TC) or detection failure: conservative, safe on all gens.
    return {"conv_tm": 1024, "fc_tm": 1024, "vmem_limit": 48 * 1024 * 1024}


def _choose_tm(M, max_tm):
    """M-tile: multiple of 8, <= max_tm, and grid >= 2 whenever the work can be
    split (shards the "parallel" axis across v7x's 2 TCs, enables pipelining)."""
    Mr = _round_up(max(M, 8), 8)
    n_steps = max(2, _cdiv(Mr, max_tm))
    tm = _round_up(_cdiv(Mr, n_steps), 8)
    if tm >= Mr:                      # too small to split into >= 2 full tiles
        tm = Mr
    return min(tm, max_tm)


# ---------------------------------------------------------------------------
# Pallas kernels
# ---------------------------------------------------------------------------
def conv_relu_pool_kernel(p_ref, w_ref, b_ref, o_ref):
    """Fused im2col-GEMM + bias + ReLU + 2x2 maxpool.

    p_ref: (4, TM, K) bf16 -- 4 pool-window phases of the patch matrix
    w_ref: (K, C)     bf16 -- VMEM-resident weight
    b_ref: (1, C)     f32
    o_ref: (TM, C)         -- pooled output rows (n, oh/2, ow/2) row-major
    """
    _, tm, k = p_ref.shape
    # One long MXU stream: merge the phase axis into rows (free — K stays on
    # lanes, TM is a multiple of 8), single dot, f32 accumulation.
    p = p_ref[...].reshape(4 * tm, k)
    z = jnp.dot(p, w_ref[...], preferred_element_type=jnp.float32)   # (4*TM, C)
    z = z.reshape(4, tm, z.shape[-1])
    # Max over phases first, then ONE bias+ReLU pass (== per-phase bias/ReLU
    # then max: shared bias, ReLU monotone).
    pooled = jnp.maximum(jnp.maximum(z[0], z[1]), jnp.maximum(z[2], z[3]))
    o_ref[...] = jnp.maximum(pooled + b_ref[...], 0.0).astype(o_ref.dtype)


def fc_logsoftmax_kernel(x_ref, w_ref, b_ref, o_ref):
    z = jnp.dot(x_ref[...], w_ref[...], preferred_element_type=jnp.float32)
    z = z + b_ref[...]
    m = jnp.max(z, axis=-1, keepdims=True)
    lse = m + jnp.log(jnp.sum(jnp.exp(z - m), axis=-1, keepdims=True))
    o_ref[...] = (z - lse).astype(o_ref.dtype)


# ---------------------------------------------------------------------------
# pallas_call wrappers (M-tiled grids, weights VMEM-resident)
# ---------------------------------------------------------------------------
def conv_relu_pool(patches_ph, w, b, *, out_dtype=jnp.bfloat16):
    """patches_ph: (4, M, K) bf16; w: (K, C) bf16; b: (C,) f32 -> (M, C)."""
    _, M, K = patches_ph.shape
    C = w.shape[1]
    budget = _tpu_budget()
    tm = _choose_tm(M, budget["conv_tm"])
    Mp = _round_up(M, tm)
    if Mp != M:
        patches_ph = jnp.pad(patches_ph, ((0, 0), (0, Mp - M), (0, 0)))
    grid = (Mp // tm,)

    flops = 2 * 4 * Mp * K * C
    bytes_accessed = (4 * Mp * K * 2 + K * C * 2 + C * 4
                      + Mp * C * jnp.dtype(out_dtype).itemsize)

    out = pl.pallas_call(
        conv_relu_pool_kernel,
        out_shape=jax.ShapeDtypeStruct((Mp, C), out_dtype),
        grid=grid,
        in_specs=[
            pl.BlockSpec((4, tm, K), lambda i: (0, i, 0)),   # patch phases, M-tiled
            pl.BlockSpec((K, C), lambda i: (0, 0)),          # weight: VMEM-resident
            pl.BlockSpec((1, C), lambda i: (0, 0)),          # bias:   VMEM-resident
        ],
        out_specs=pl.BlockSpec((tm, C), lambda i: (i, 0)),
        compiler_params=pltpu.CompilerParams(
            dimension_semantics=("parallel",),
            vmem_limit_bytes=budget["vmem_limit"]),
        cost_estimate=pl.CostEstimate(flops=flops, transcendentals=0,
                                      bytes_accessed=bytes_accessed),
    )(patches_ph, w, b.reshape(1, C).astype(jnp.float32))
    return out[:M]


def fc_logsoftmax(x, w, b):
    """x: (M, K) bf16; w: (K, C) bf16; b: (C,) f32 -> (M, C) f32 log-probs."""
    M, K = x.shape
    C = w.shape[1]
    budget = _tpu_budget()
    tm = _choose_tm(M, budget["fc_tm"])
    Mp = _round_up(M, tm)
    if Mp != M:
        x = jnp.pad(x, ((0, Mp - M), (0, 0)))

    out = pl.pallas_call(
        fc_logsoftmax_kernel,
        out_shape=jax.ShapeDtypeStruct((Mp, C), jnp.float32),
        grid=(Mp // tm,),
        in_specs=[
            pl.BlockSpec((tm, K), lambda i: (i, 0)),
            pl.BlockSpec((K, C), lambda i: (0, 0)),          # fc weight VMEM-resident
            pl.BlockSpec((1, C), lambda i: (0, 0)),
        ],
        out_specs=pl.BlockSpec((tm, C), lambda i: (i, 0)),
        compiler_params=pltpu.CompilerParams(
            dimension_semantics=("parallel",),
            vmem_limit_bytes=budget["vmem_limit"]),
        cost_estimate=pl.CostEstimate(
            flops=2 * Mp * K * C, transcendentals=Mp * C,
            bytes_accessed=Mp * K * 2 + K * C * 2 + C * 4 + Mp * C * 4),
    )(x, w, b.reshape(1, C).astype(jnp.float32))
    return out[:M]


# ---------------------------------------------------------------------------
# Glue: polyphase im2col (valid conv, stride 1, followed by 2x2/2 maxpool)
# ---------------------------------------------------------------------------
def im2col_pool_phases_nhwc(y, k):
    """y: (N, H, W, C) NHWC -> (4, N*PH*PW, k*k*C), PH, PW.

    Phase p = 2*ph + pw holds the patch rows of conv-output pixels
    (2i+ph, 2j+pw); patch columns are ordered (kh, kw, cin) to match the
    prepped weight layout.  Pure static strided slices (runs in XLA).
    """
    N, H, W, C = y.shape
    OH, OW = H - k + 1, W - k + 1
    PH, PW = OH // 2, OW // 2
    phases = []
    for ph in range(2):
        for pw in range(2):
            cols = []
            for kh in range(k):
                for kw in range(k):
                    a, b = ph + kh, pw + kw
                    cols.append(y[:, a:a + 2 * PH:2, b:b + 2 * PW:2, :])
            pm = jnp.stack(cols, axis=3)                  # (N, PH, PW, k*k, C)
            phases.append(pm.reshape(N * PH * PW, k * k * C))
    return jnp.stack(phases, axis=0), PH, PW              # (4, N*PH*PW, k*k*C)


# ---------------------------------------------------------------------------
# Parameters: torch-layout init, one-time permutation into kernel layouts
# ---------------------------------------------------------------------------
def init_params(key):
    ks = jax.random.split(key, 6)

    def u(k, shape, fan_in):
        bound = 1.0 / float(fan_in) ** 0.5
        return jax.random.uniform(k, shape, jnp.float32, -bound, bound)

    w1 = u(ks[0], (16, 1, 5, 5), 25)        # Conv2d(1, 16, 5)   (torch layout)
    b1 = u(ks[1], (16,), 25)
    w2 = u(ks[2], (256, 16, 5, 5), 400)     # Conv2d(16, 256, 5)
    b2 = u(ks[3], (256,), 400)
    wf = u(ks[4], (10, 4096), 4096)         # Linear(4096, 10) weight (out, in)
    bf_ = u(ks[5], (10,), 4096)
    return w1, b1, w2, b2, wf, bf_


def prep_params(params, dtype=jnp.bfloat16):
    """One-time weight permutation (moves all layout work out of the forward)."""
    w1, b1, w2, b2, wf, bf_ = params
    # conv weights: (cout, cin, kh, kw) -> (kh, kw, cin) x cout, matches im2col cols.
    wm1 = jnp.transpose(w1, (2, 3, 1, 0)).reshape(25, 16).astype(dtype)
    wm2 = jnp.transpose(w2, (2, 3, 1, 0)).reshape(400, 256).astype(dtype)
    # fc: torch's view(-1,4096) flattens NCHW (c,h,w); our flat is NHWC (h,w,c),
    # so permute the fc weight columns once instead of transposing activations.
    wmf = (jnp.transpose(wf.reshape(10, 256, 4, 4), (0, 2, 3, 1))
           .reshape(10, 4096).T.astype(dtype))                       # (4096, 10)
    return wm1, b1, wm2, b2, wmf, bf_


# ---------------------------------------------------------------------------
# Full forward (no runtime activation transposes)
# ---------------------------------------------------------------------------
def netconv_forward(x, prepped):
    wm1, b1, wm2, b2, wmf, bf_ = prepped
    N, C0, H, W = x.shape                                    # (N, 1, 28, 28)
    xh = x.reshape(N, H, W, C0).astype(jnp.bfloat16)         # NCHW C=1 -> NHWC (free)

    # l1: Conv2d(1,16,5) + ReLU + MaxPool2d(2,2), fully fused in one kernel.
    p1, ph1, pw1 = im2col_pool_phases_nhwc(xh, 5)            # (4, N*144, 25)
    y1 = conv_relu_pool(p1, wm1, b1)                         # (N*144, 16) bf16
    y1 = y1.reshape(N, ph1, pw1, 16)                         # NHWC (N, 12, 12, 16)

    # l2: Conv2d(16,256,5) + ReLU + MaxPool2d(2,2), fused (the real MXU GEMM).
    p2, ph2, pw2 = im2col_pool_phases_nhwc(y1, 5)            # (4, N*16, 400)
    y2 = conv_relu_pool(p2, wm2, b2)                         # (N*16, 256) bf16

    # torch's out.view(-1, 4096): handled via the wf column permutation in prep,
    # so a plain (free) reshape of the NHWC rows is enough here.
    flat = y2.reshape(N, ph2 * pw2 * 256)                    # (N, 4096) bf16

    return fc_logsoftmax(flat, wmf, bf_)                     # (N, 10) f32 log-probs


if __name__ == "__main__":
    # Conv/pool arithmetic (28 -5+1=24 ->12 -5+1=8 ->4; 256*4*4=4096) fixes the
    # spatial size to 28x28 single-channel (MNIST-like); small batch of 2.
    x = jax.random.normal(jax.random.PRNGKey(0), (2, 1, 28, 28), dtype=jnp.float32)
    params = init_params(jax.random.PRNGKey(42))
    prepped = prep_params(params)

    fwd = jax.jit(netconv_forward)
    out = jax.block_until_ready(fwd(x, prepped))
    assert out.shape == (2, 10)
    assert bool(jnp.all(jnp.isfinite(out)))
    print("KERNEL_OK")
</pallas_src>

<mosaic_0001>
module attributes {stable_mosaic.version = 11 : i64} {
  func.func @conv_relu_pool_kernel(%arg0: i32, %arg1: memref<4x144x25xbf16, #tpu.memory_space<vmem>>, %arg2: memref<25x16xbf16, #tpu.memory_space<vmem>>, %arg3: memref<1x16xf32, #tpu.memory_space<vmem>>, %arg4: memref<144x16xbf16, #tpu.memory_space<vmem>>) attributes {dimension_semantics = [#tpu.dimension_semantics<parallel>], iteration_bounds = array<i64: 2>, scalar_prefetch = 0 : i64, scratch_operands = 0 : i64, tpu.core_type = #tpu.core_type<tc>, window_params = [{transform_indices = @transform_0, window_bounds = array<i64: 4, 144, 25>}, {pipeline_mode = #tpu.pipeline_mode<synchronous>, transform_indices = @transform_1, window_bounds = array<i64: 25, 16>}, {pipeline_mode = #tpu.pipeline_mode<synchronous>, transform_indices = @transform_2, window_bounds = array<i64: 1, 16>}, {transform_indices = @transform_3, window_bounds = array<i64: 144, 16>}]} {
    %c0 = arith.constant 0 : index
    %c0_0 = arith.constant 0 : index
    %c0_1 = arith.constant 0 : index
    %0 = vector.load %arg1[%c0, %c0_0, %c0_1] : memref<4x144x25xbf16, #tpu.memory_space<vmem>>, vector<4x144x25xbf16>
    %1 = vector.shape_cast %0 : vector<4x144x25xbf16> to vector<576x25xbf16>
    %c0_2 = arith.constant 0 : index
    %c0_3 = arith.constant 0 : index
    %2 = vector.load %arg2[%c0_2, %c0_3] : memref<25x16xbf16, #tpu.memory_space<vmem>>, vector<25x16xbf16>
    %cst = arith.constant dense<0.000000e+00> : vector<576x16xf32>
    %3 = tpu.matmul %1, %2, %cst {dimension_numbers = #tpu.dot_dimension_numbers<[1], [0], [0], [1], [0, 0, 1, 1], [], []>} : vector<576x25xbf16>, vector<25x16xbf16>, vector<576x16xf32> -> vector<576x16xf32>
    %4 = vector.shape_cast %3 : vector<576x16xf32> to vector<4x144x16xf32>
    %5 = vector.extract_strided_slice %4 {offsets = [0, 0, 0], sizes = [1, 144, 16], strides = [1, 1, 1]} : vector<4x144x16xf32> to vector<1x144x16xf32>
    %6 = vector.shape_cast %5 : vector<1x144x16xf32> to vector<144x16xf32>
    %7 = vector.extract_strided_slice %4 {offsets = [1, 0, 0], sizes = [1, 144, 16], strides = [1, 1, 1]} : vector<4x144x16xf32> to vector<1x144x16xf32>
    %8 = vector.shape_cast %7 : vector<1x144x16xf32> to vector<144x16xf32>
    %9 = arith.maximumf %6, %8 : vector<144x16xf32>
    %10 = vector.extract_strided_slice %4 {offsets = [2, 0, 0], sizes = [1, 144, 16], strides = [1, 1, 1]} : vector<4x144x16xf32> to vector<1x144x16xf32>
    %11 = vector.shape_cast %10 : vector<1x144x16xf32> to vector<144x16xf32>
    %12 = vector.extract_strided_slice %4 {offsets = [3, 0, 0], sizes = [1, 144, 16], strides = [1, 1, 1]} : vector<4x144x16xf32> to vector<1x144x16xf32>
    %13 = vector.shape_cast %12 : vector<1x144x16xf32> to vector<144x16xf32>
    %14 = arith.maximumf %11, %13 : vector<144x16xf32>
    %15 = arith.maximumf %9, %14 : vector<144x16xf32>
    %c0_4 = arith.constant 0 : index
    %c0_5 = arith.constant 0 : index
    %16 = vector.load %arg3[%c0_4, %c0_5] : memref<1x16xf32, #tpu.memory_space<vmem>>, vector<1x16xf32>
    %17 = vector.broadcast %16 : vector<1x16xf32> to vector<144x16xf32>
    %18 = arith.addf %15, %17 : vector<144x16xf32>
    %cst_6 = arith.constant 0.000000e+00 : f32
    %19 = vector.broadcast %cst_6 : f32 to vector<144x16xf32>
    %20 = arith.maximumf %18, %19 : vector<144x16xf32>
    %21 = arith.truncf %20 : vector<144x16xf32> to vector<144x16xbf16>
    %c0_7 = arith.constant 0 : index
    %c0_8 = arith.constant 0 : index
    %22 = vector.load %arg4[%c0_7, %c0_8] : memref<144x16xbf16, #tpu.memory_space<vmem>>, vector<144x16xbf16>
    tpu.vector_store %arg4[%c0_7, %c0_8], %21 {strides = array<i32>} : memref<144x16xbf16, #tpu.memory_space<vmem>>, vector<144x16xbf16>,
    return
  }
  func.func @transform_0(%arg0: i32) -> (i32, i32, i32) {
    %c0_i32 = arith.constant 0 : i32
    %c0_i32_0 = arith.constant 0 : i32
    %c0_i32_1 = arith.constant 0 : i32
    return %c0_i32, %arg0, %c0_i32_0 : i32, i32, i32
  }
  func.func @transform_1(%arg0: i32) -> (i32, i32) {
    %c0_i32 = arith.constant 0 : i32
    %c0_i32_0 = arith.constant 0 : i32
    %c0_i32_1 = arith.constant 0 : i32
    return %c0_i32, %c0_i32_0 : i32, i32
  }
  func.func @transform_2(%arg0: i32) -> (i32, i32) {
    %c0_i32 = arith.constant 0 : i32
    %c0_i32_0 = arith.constant 0 : i32
    %c0_i32_1 = arith.constant 0 : i32
    return %c0_i32, %c0_i32_0 : i32, i32
  }
  func.func @transform_3(%arg0: i32) -> (i32, i32) {
    %c0_i32 = arith.constant 0 : i32
    %c0_i32_0 = arith.constant 0 : i32
    return %arg0, %c0_i32 : i32, i32
  }
}

module attributes {stable_mosaic.version = 11 : i64} {
  func.func @conv_relu_pool_kernel(%arg0: i32, %arg1: memref<4x16x400xbf16, #tpu.memory_space<vmem>>, %arg2: memref<400x256xbf16, #tpu.memory_space<vmem>>, %arg3: memref<1x256xf32, #tpu.memory_space<vmem>>, %arg4: memref<16x256xbf16, #tpu.memory_space<vmem>>) attributes {dimension_semantics = [#tpu.dimension_semantics<parallel>], iteration_bounds = array<i64: 2>, scalar_prefetch = 0 : i64, scratch_operands = 0 : i64, tpu.core_type = #tpu.core_type<tc>, window_params = [{transform_indices = @transform_0, window_bounds = array<i64: 4, 16, 400>}, {pipeline_mode = #tpu.pipeline_mode<synchronous>, transform_indices = @transform_1, window_bounds = array<i64: 400, 256>}, {pipeline_mode = #tpu.pipeline_mode<synchronous>, transform_indices = @transform_2, window_bounds = array<i64: 1, 256>}, {transform_indices = @transform_3, window_bounds = array<i64: 16, 256>}]} {
    %c0 = arith.constant 0 : index
    %c0_0 = arith.constant 0 : index
    %c0_1 = arith.constant 0 : index
    %0 = vector.load %arg1[%c0, %c0_0, %c0_1] : memref<4x16x400xbf16, #tpu.memory_space<vmem>>, vector<4x16x400xbf16>
    %1 = vector.shape_cast %0 : vector<4x16x400xbf16> to vector<64x400xbf16>
    %c0_2 = arith.constant 0 : index
    %c0_3 = arith.constant 0 : index
    %2 = vector.load %arg2[%c0_2, %c0_3] : memref<400x256xbf16, #tpu.memory_space<vmem>>, vector<400x256xbf16>
    %cst = arith.constant dense<0.000000e+00> : vector<64x256xf32>
    %3 = tpu.matmul %1, %2, %cst {dimension_numbers = #tpu.dot_dimension_numbers<[1], [0], [0], [1], [0, 0, 1, 1], [], []>} : vector<64x400xbf16>, vector<400x256xbf16>, vector<64x256xf32> -> vector<64x256xf32>
    %4 = vector.shape_cast %3 : vector<64x256xf32> to vector<4x16x256xf32>
    %5 = vector.extract_strided_slice %4 {offsets = [0, 0, 0], sizes = [1, 16, 256], strides = [1, 1, 1]} : vector<4x16x256xf32> to vector<1x16x256xf32>
    %6 = vector.shape_cast %5 : vector<1x16x256xf32> to vector<16x256xf32>
    %7 = vector.extract_strided_slice %4 {offsets = [1, 0, 0], sizes = [1, 16, 256], strides = [1, 1, 1]} : vector<4x16x256xf32> to vector<1x16x256xf32>
    %8 = vector.shape_cast %7 : vector<1x16x256xf32> to vector<16x256xf32>
    %9 = arith.maximumf %6, %8 : vector<16x256xf32>
    %10 = vector.extract_strided_slice %4 {offsets = [2, 0, 0], sizes = [1, 16, 256], strides = [1, 1, 1]} : vector<4x16x256xf32> to vector<1x16x256xf32>
    %11 = vector.shape_cast %10 : vector<1x16x256xf32> to vector<16x256xf32>
    %12 = vector.extract_strided_slice %4 {offsets = [3, 0, 0], sizes = [1, 16, 256], strides = [1, 1, 1]} : vector<4x16x256xf32> to vector<1x16x256xf32>
    %13 = vector.shape_cast %12 : vector<1x16x256xf32> to vector<16x256xf32>
    %14 = arith.maximumf %11, %13 : vector<16x256xf32>
    %15 = arith.maximumf %9, %14 : vector<16x256xf32>
    %c0_4 = arith.constant 0 : index
    %c0_5 = arith.constant 0 : index
    %16 = vector.load %arg3[%c0_4, %c0_5] : memref<1x256xf32, #tpu.memory_space<vmem>>, vector<1x256xf32>
    %17 = vector.broadcast %16 : vector<1x256xf32> to vector<16x256xf32>
    %18 = arith.addf %15, %17 : vector<16x256xf32>
    %cst_6 = arith.constant 0.000000e+00 : f32
    %19 = vector.broadcast %cst_6 : f32 to vector<16x256xf32>
    %20 = arith.maximumf %18, %19 : vector<16x256xf32>
    %21 = arith.truncf %20 : vector<16x256xf32> to vector<16x256xbf16>
    %c0_7 = arith.constant 0 : index
    %c0_8 = arith.constant 0 : index
    %22 = vector.load %arg4[%c0_7, %c0_8] : memref<16x256xbf16, #tpu.memory_space<vmem>>, vector<16x256xbf16>
    tpu.vector_store %arg4[%c0_7, %c0_8], %21 {strides = array<i32>} : memref<16x256xbf16, #tpu.memory_space<vmem>>, vector<16x256xbf16>,
    return
  }
  func.func @transform_0(%arg0: i32) -> (i32, i32, i32) {
    %c0_i32 = arith.constant 0 : i32
    %c0_i32_0 = arith.constant 0 : i32
    %c0_i32_1 = arith.constant 0 : i32
    return %c0_i32, %arg0, %c0_i32_0 : i32, i32, i32
  }
  func.func @transform_1(%arg0: i32) -> (i32, i32) {
    %c0_i32 = arith.constant 0 : i32
    %c0_i32_0 = arith.constant 0 : i32
    %c0_i32_1 = arith.constant 0 : i32
    return %c0_i32, %c0_i32_0 : i32, i32
  }
  func.func @transform_2(%arg0: i32) -> (i32, i32) {
    %c0_i32 = arith.constant 0 : i32
    %c0_i32_0 = arith.constant 0 : i32
    %c0_i32_1 = arith.constant 0 : i32
    return %c0_i32, %c0_i32_0 : i32, i32
  }
  func.func @transform_3(%arg0: i32) -> (i32, i32) {
    %c0_i32 = arith.constant 0 : i32
    %c0_i32_0 = arith.constant 0 : i32
    return %arg0, %c0_i32 : i32, i32
  }
}

module attributes {stable_mosaic.version = 11 : i64} {
  func.func @fc_logsoftmax_kernel(%arg0: i32, %arg1: memref<8x4096xbf16, #tpu.memory_space<vmem>>, %arg2: memref<4096x10xbf16, #tpu.memory_space<vmem>>, %arg3: memref<1x10xf32, #tpu.memory_space<vmem>>, %arg4: memref<8x10xf32, #tpu.memory_space<vmem>>) attributes {dimension_semantics = [#tpu.dimension_semantics<parallel>], iteration_bounds = array<i64: 1>, scalar_prefetch = 0 : i64, scratch_operands = 0 : i64, tpu.core_type = #tpu.core_type<tc>, window_params = [{transform_indices = @transform_0, window_bounds = array<i64: 8, 4096>}, {pipeline_mode = #tpu.pipeline_mode<synchronous>, transform_indices = @transform_1, window_bounds = array<i64: 4096, 10>}, {pipeline_mode = #tpu.pipeline_mode<synchronous>, transform_indices = @transform_2, window_bounds = array<i64: 1, 10>}, {transform_indices = @transform_3, window_bounds = array<i64: 8, 10>}]} {
    %c0 = arith.constant 0 : index
    %c0_0 = arith.constant 0 : index
    %0 = vector.load %arg1[%c0, %c0_0] : memref<8x4096xbf16, #tpu.memory_space<vmem>>, vector<8x4096xbf16>
    %c0_1 = arith.constant 0 : index
    %c0_2 = arith.constant 0 : index
    %1 = vector.load %arg2[%c0_1, %c0_2] : memref<4096x10xbf16, #tpu.memory_space<vmem>>, vector<4096x10xbf16>
    %cst = arith.constant dense<0.000000e+00> : vector<8x10xf32>
    %2 = tpu.matmul %0, %1, %cst {dimension_numbers = #tpu.dot_dimension_numbers<[1], [0], [0], [1], [0, 0, 1, 1], [], []>} : vector<8x4096xbf16>, vector<4096x10xbf16>, vector<8x10xf32> -> vector<8x10xf32>
    %c0_3 = arith.constant 0 : index
    %c0_4 = arith.constant 0 : index
    %3 = vector.load %arg3[%c0_3, %c0_4] : memref<1x10xf32, #tpu.memory_space<vmem>>, vector<1x10xf32>
    %4 = vector.broadcast %3 : vector<1x10xf32> to vector<8x10xf32>
    %5 = arith.addf %2, %4 : vector<8x10xf32>
    %cst_5 = arith.constant dense<0xFF800000> : vector<8xf32>
    %6 = vector.multi_reduction <maximumf>, %5, %cst_5 [1] : vector<8x10xf32> to vector<8xf32>
    %7 = vector.shape_cast %6 : vector<8xf32> to vector<8x1xf32>
    %8 = vector.broadcast %7 : vector<8x1xf32> to vector<8x10xf32>
    %9 = arith.subf %5, %8 : vector<8x10xf32>
    %10 = math.exp %9 : vector<8x10xf32>
    %cst_6 = arith.constant dense<0.000000e+00> : vector<8xf32>
    %11 = vector.multi_reduction <add>, %10, %cst_6 [1] : vector<8x10xf32> to vector<8xf32>
    %12 = vector.shape_cast %11 : vector<8xf32> to vector<8x1xf32>
    %13 = math.log %12 : vector<8x1xf32>
    %14 = arith.addf %7, %13 : vector<8x1xf32>
    %15 = vector.broadcast %14 : vector<8x1xf32> to vector<8x10xf32>
    %16 = arith.subf %5, %15 : vector<8x10xf32>
    %c0_7 = arith.constant 0 : index
    %c0_8 = arith.constant 0 : index
    %17 = vector.load %arg4[%c0_7, %c0_8] : memref<8x10xf32, #tpu.memory_space<vmem>>, vector<8x10xf32>
    tpu.vector_store %arg4[%c0_7, %c0_8], %16 {strides = array<i32>} : memref<8x10xf32, #tpu.memory_space<vmem>>, vector<8x10xf32>,
    return
  }
  func.func @transform_0(%arg0: i32) -> (i32, i32) {
    %c0_i32 = arith.constant 0 : i32
    %c0_i32_0 = arith.constant 0 : i32
    return %arg0, %c0_i32 : i32, i32
  }
  func.func @transform_1(%arg0: i32) -> (i32, i32) {
    %c0_i32 = arith.constant 0 : i32
    %c0_i32_0 = arith.constant 0 : i32
    %c0_i32_1 = arith.constant 0 : i32
    return %c0_i32, %c0_i32_0 : i32, i32
  }
  func.func @transform_2(%arg0: i32) -> (i32, i32) {
    %c0_i32 = arith.constant 0 : i32
    %c0_i32_0 = arith.constant 0 : i32
    %c0_i32_1 = arith.constant 0 : i32
    return %c0_i32, %c0_i32_0 : i32, i32
  }
  func.func @transform_3(%arg0: i32) -> (i32, i32) {
    %c0_i32 = arith.constant 0 : i32
    %c0_i32_0 = arith.constant 0 : i32
    return %arg0, %c0_i32 : i32, i32
  }
}

</mosaic_0001>

<bundles_post_ra>
// kernel: netconv_forward.3
= control target key start
LH: loop header
LB: loop body
LE: loop exit
PB: predicated region body
PF: predicated region fallthrough
CT: control target
= control target key end

     0   :  { %s1803_s12 = smov 0   ;;  %s1805_s13 = smov 0   ;;  %s2162_s0 = inlined_call_operand.vmem [shape: bf16[4,288,25], index: 0, kind: input, shape index: {}]   ;;  %s2163_s1 = inlined_call_operand.vmem [shape: bf16[25,16], index: 1, kind: input, shape index: {}]   ;;  %s2164_s2 = inlined_call_operand.vmem [shape: f32[1,16], index: 2, kind: input, shape index: {}]   ;;  %s2165_s3 = inlined_call_operand.vmem [shape: bf16[288,16], index: 3, kind: output, shape index: {}]  }
   0x1   :  { %s1807_s14 = smov 0  }
   0x2 LB: > { %s1454_s15 = sadd.s32 4294967295, %s1780_s14   ;;  %s1820_s16 = sadd.s32 1, %s1780_s14   ;;  %s1780_s14 = sphi %s1807_s14, %s2168_s14   ;;  %s1776_s13 = sphi %s1805_s13, %s2167_s13   ;;  %s1772_s12 = sphi %s1803_s12, %s2166_s12  }
   0x3   : > { %s17_s17 = ssub.s32 %s1780_s14, %s1820_s16  ;;  %s20_s18 = sadd.s32 1, %s1776_s13 }
   0x4   : > { %p18_p0 = scmp.eq.s32.totalorder %s17_s17, 0  ;;  %p27_p1 = scmp.ne.s32.totalorder %s1776_s13, %s1772_s12 }
   0x5   : > { %p28_p2 = scmp.eq.s32.totalorder %s1780_s14, 0  ;;  %p1457_p4 = scmp.ge.s32.totalorder %s1780_s14, 2 }
   0x6   : > { %s1829_s19 = scalar_select %p18_p0, %s1776_s13, %s20_s18  }
   0x7   : > { %p29_p3 = por %p28_p2, %p27_p1  ;;  %127 = sbr.rel (%p1457_p4) target bundleno = 37 (0x25), region = 24 }
   0xe   : > { %130 = sbr.rel (!%p29_p3) target bundleno = 37 (0x25), region = 28  ;;  %s132_s20 = sand.u32 (%p29_p3), 1, %s1776_s13  }
   0xf   : > { %s1556_s21 = smul.u32 (%p29_p3), 72, %s1780_s14 }
  0x10   : > { %s1693_s22 = smul.u32 (%p29_p3), 288, %s132_s20 }
  0x11   : > { %s1837_s25 = scalar_lea.vmem (%p29_p3), %s2162_s0, %s1556_s21 }
  0x12   : > { %v153_v0 = vld [vmem:[%s1837_s25] sm:$0xff] (%p29_p3)   ;;  %v157_v1 = vld [vmem:[%s1837_s25 + $0x8] sm:$0xff] (%p29_p3)   ;;  %v161_v2 = vld [vmem:[%s1837_s25 + $0x10] sm:$0xff] (%p29_p3)   ;;  %s1842_s26 = scalar_lea.vmem (%p29_p3), [#allocation2], %s1693_s22 }
  0x13   : > { %154 = vst [vmem:[%s1842_s26] sm:$0xff] (%p29_p3), %v153_v0   ;;  %158 = vst [vmem:[%s1842_s26 + $0x8] sm:$0xff] (%p29_p3), %v157_v1   ;;  %v165_v3 = vld [vmem:[%s1837_s25 + $0x18] sm:$0xff] (%p29_p3)   ;;  %v169_v4 = vld [vmem:[%s1837_s25 + $0x20] sm:$0xff] (%p29_p3)  }
  0x14   : > { %162 = vst [vmem:[%s1842_s26 + $0x10] sm:$0xff] (%p29_p3), %v161_v2   ;;  %v173_v5 = vld [vmem:[%s1837_s25 + $0x28] sm:$0xff] (%p29_p3)   ;;  %166 = vst [vmem:[%s1842_s26 + $0x18] sm:$0xff] (%p29_p3), %v165_v3   ;;  %v177_v6 = vld [vmem:[%s1837_s25 + $0x30] sm:$0xff] (%p29_p3)  }
  0x15   : > { %170 = vst [vmem:[%s1842_s26 + $0x20] sm:$0xff] %v169_v4   ;;  %174 = vst [vmem:[%s1842_s26 + $0x28] sm:$0xff] %v173_v5   ;;  %v181_v7 = vld [vmem:[%s1837_s25 + $0x38] sm:$0xff]   ;;  %v185_v8 = vld [vmem:[%s1837_s25 + $0x40] sm:$0xff]  }
  0x16   : > { %178 = vst [vmem:[%s1842_s26 + $0x30] sm:$0xff] %v177_v6   ;;  %182 = vst [vmem:[%s1842_s26 + $0x38] sm:$0xff] %v181_v7   ;;  %v189_v9 = vld [vmem:[%s1837_s25 + $0x90] sm:$0xff]   ;;  %v193_v10 = vld [vmem:[%s1837_s25 + $0x98] sm:$0xff]  }
  0x17   : > { %186 = vst [vmem:[%s1842_s26 + $0x40] sm:$0xff] %v185_v8   ;;  %v197_v11 = vld [vmem:[%s1837_s25 + $0xa0] sm:$0xff]   ;;  %190 = vst [vmem:[%s1842_s26 + $0x48] sm:$0xff] %v189_v9   ;;  %v201_v12 = vld [vmem:[%s1837_s25 + $0xa8] sm:$0xff]  }
  0x18   : > { %194 = vst [vmem:[%s1842_s26 + $0x50] sm:$0xff] %v193_v10   ;;  %198 = vst [vmem:[%s1842_s26 + $0x58] sm:$0xff] %v197_v11   ;;  %v205_v13 = vld [vmem:[%s1837_s25 + $0xb0] sm:$0xff]   ;;  %v209_v14 = vld [vmem:[%s1837_s25 + $0xb8] sm:$0xff]  }
  0x19   : > { %202 = vst [vmem:[%s1842_s26 + $0x60] sm:$0xff] %v201_v12   ;;  %206 = vst [vmem:[%s1842_s26 + $0x68] sm:$0xff] %v205_v13   ;;  %v213_v15 = vld [vmem:[%s1837_s25 + $0xc0] sm:$0xff]   ;;  %v217_v16 = vld [vmem:[%s1837_s25 + $0xc8] sm:$0xff]  }
  0x1a   : > { %210 = vst [vmem:[%s1842_s26 + $0x70] sm:$0xff] %v209_v14   ;;  %v221_v17 = vld [vmem:[%s1837_s25 + $0xd0] sm:$0xff]   ;;  %214 = vst [vmem:[%s1842_s26 + $0x78] sm:$0xff] %v213_v15   ;;  %v225_v18 = vld [vmem:[%s1837_s25 + $0x120] sm:$0xff]  }
  0x1b   : > { %218 = vst [vmem:[%s1842_s26 + $0x80] sm:$0xff] %v217_v16   ;;  %222 = vst [vmem:[%s1842_s26 + $0x88] sm:$0xff] %v221_v17   ;;  %v229_v19 = vld [vmem:[%s1837_s25 + $0x128] sm:$0xff]   ;;  %v233_v20 = vld [vmem:[%s1837_s25 + $0x130] sm:$0xff]  }
  0x1c   : > { %226 = vst [vmem:[%s1842_s26 + $0x90] sm:$0xff] %v225_v18   ;;  %230 = vst [vmem:[%s1842_s26 + $0x98] sm:$0xff] %v229_v19   ;;  %v237_v21 = vld [vmem:[%s1837_s25 + $0x138] sm:$0xff]   ;;  %v241_v22 = vld [vmem:[%s1837_s25 + $0x140] sm:$0xff]  }
  0x1d   : > { %234 = vst [vmem:[%s1842_s26 + $0xa0] sm:$0xff] %v233_v20   ;;  %v245_v23 = vld [vmem:[%s1837_s25 + $0x148] sm:$0xff]   ;;  %238 = vst [vmem:[%s1842_s26 + $0xa8] sm:$0xff] %v237_v21   ;;  %v249_v24 = vld [vmem:[%s1837_s25 + $0x150] sm:$0xff]  }
  0x1e   : > { %242 = vst [vmem:[%s1842_s26 + $0xb0] sm:$0xff] %v241_v22   ;;  %246 = vst [vmem:[%s1842_s26 + $0xb8] sm:$0xff] %v245_v23   ;;  %v253_v25 = vld [vmem:[%s1837_s25 + $0x158] sm:$0xff]   ;;  %v257_v26 = vld [vmem:[%s1837_s25 + $0x160] sm:$0xff]  }
  0x1f   : > { %250 = vst [vmem:[%s1842_s26 + $0xc0] sm:$0xff] %v249_v24   ;;  %254 = vst [vmem:[%s1842_s26 + $0xc8] sm:$0xff] %v253_v25   ;;  %v261_v27 = vld [vmem:[%s1837_s25 + $0x1b0] sm:$0xff]   ;;  %v265_v28 = vld [vmem:[%s1837_s25 + $0x1b8] sm:$0xff]  }
  0x20   : > { %258 = vst [vmem:[%s1842_s26 + $0xd0] sm:$0xff] %v257_v26   ;;  %v269_v29 = vld [vmem:[%s1837_s25 + $0x1c0] sm:$0xff]   ;;  %262 = vst [vmem:[%s1842_s26 + $0xd8] sm:$0xff] %v261_v27   ;;  %v273_v30 = vld [vmem:[%s1837_s25 + $0x1c8] sm:$0xff]  }
  0x21   : > { %266 = vst [vmem:[%s1842_s26 + $0xe0] sm:$0xff] %v265_v28   ;;  %270 = vst [vmem:[%s1842_s26 + $0xe8] sm:$0xff] %v269_v29   ;;  %v277_v31 = vld [vmem:[%s1837_s25 + $0x1d0] sm:$0xff]   ;;  %v281_v32 = vld [vmem:[%s1837_s25 + $0x1d8] sm:$0xff]  }
  0x22   : > { %274 = vst [vmem:[%s1842_s26 + $0xf0] sm:$0xff] %v273_v30   ;;  %278 = vst [vmem:[%s1842_s26 + $0xf8] sm:$0xff] %v277_v31   ;;  %v285_v33 = vld [vmem:[%s1837_s25 + $0x1e0] sm:$0xff]   ;;  %v289_v34 = vld [vmem:[%s1837_s25 + $0x1e8] sm:$0xff]  }
  0x23   : > { %282 = vst [vmem:[%s1842_s26 + $0x100] sm:$0xff] %v281_v32   ;;  %v293_v35 = vld [vmem:[%s1837_s25 + $0x1f0] sm:$0xff]   ;;  %286 = vst [vmem:[%s1842_s26 + $0x108] sm:$0xff] %v285_v33  }
  0x24   : > { %290 = vst [vmem:[%s1842_s26 + $0x110] sm:$0xff] %v289_v34   ;;  %294 = vst [vmem:[%s1842_s26 + $0x118] sm:$0xff] %v293_v35  }
  0x25 PF: > { %p1459_p5 = scmp.ge.s32.totalorder %s1780_s14, 1  ;;  %p462_p6 = scmp.lt.s32.totalorder %s1780_s14, 3 }
  0x27   : > { %p463_p7 = pnand %p1459_p5, %p462_p6 }
  0x28   : > { %v1720_v36 = vld [vmem:[%s2163_s1] sm:$0xff] (!%p463_p7)   ;;  %vm876_vm0 = vcmask (!%p463_p7), 1043456   ;;  %v1721_v37 = vld [vmem:[%s2163_s1 + $0x8] sm:$0x1f] (!%p463_p7)   ;;  %vm877_vm1 = vcmask (!%p463_p7), 1044480   ;;  %s469_s4 = sand.u32 (!%p463_p7), 1, %s1772_s12  }
  0x29   : > { %466 = sbr.rel (%p463_p7) target bundleno = 340 (0x154), region = 69  ;;  %1613 = vmatprep.subr.bf16.mxu0 (!%p463_p7), %v1720_v36  ;;  %1689 = vmatprep.subr.bf16.mxu1 (!%p463_p7), %v1720_v36  ;;  %v1782_v38 = vmov (!%p463_p7), 65535   ;;  %vm767_vm2 = vcmask (!%p463_p7), 203776   ;;  %vm1373_vm3 = vcmask (!%p463_p7), 125952  }
  0x2a   : > { %1614 = vmatpush3.bf16.msra.mxu0 (!%p463_p7), %v1720_v36  ;;  %1691 = vmatpush3.bf16.msra.mxu1 (!%p463_p7), %v1720_v36  ;;  %v878_v39 = vsel (!%p463_p7), %vm876_vm0, 4294967295, %v1782_v38  ;;  %s1694_s5 = smul.u32 (!%p463_p7), 288, %s469_s4 }
  0x2b   : > { %v879_v40 = vsel (!%p463_p7), %vm877_vm1, %v878_v39, 0  ;;  %s493_s7 = smul.u32 (!%p463_p7), 18, %s1454_s15 }
  0x2c   : > { %v881_v41 = vand.u32 (!%p463_p7), %v1721_v37, %v879_v40  ;;  %s1922_s6 = scalar_lea.vmem (!%p463_p7), [#allocation2], %s1694_s5 }
  0x2d   : > { %v1722_v42 = vld [vmem:[%s1922_s6] sm:$0xff] (!%p463_p7)   ;;  %v1723_v43 = vld [vmem:[%s1922_s6 + $0x90] sm:$0xff] (!%p463_p7)   ;;  %v1724_v44 = vld [vmem:[%s1922_s6 + $0x8] sm:$0xff] (!%p463_p7)   ;;  %p494_p8 = scmp.lt.s32.totalorder (!%p463_p7), %s493_s7, 35 }
  0x2e   : > { %1615 = vmatprep.subr.bf16.mxu0 (!%p463_p7), %v881_v41  ;;  %1690 = vmatprep.subr.bf16.mxu1 (!%p463_p7), %v881_v41  ;;  %v1725_v45 = vld [vmem:[%s1922_s6 + $0x98] sm:$0xff] (!%p463_p7)   ;;  %v1726_v46 = vld [vmem:[%s1922_s6 + $0x10] sm:$0xff] (!%p463_p7)   ;;  %v1727_v47 = vld [vmem:[%s1922_s6 + $0xa0] sm:$0xff] (!%p463_p7)  }
  0x2f   : > { %1616 = vmatpush3.bf16.msra.mxu0 (!%p463_p7), %v881_v41  ;;  %1692 = vmatpush3.bf16.msra.mxu1 (!%p463_p7), %v881_v41  ;;  %v1728_v48 = vld [vmem:[%s1922_s6 + $0x18] sm:$0xff] (!%p463_p7)   ;;  %v1729_v49 = vld [vmem:[%s1922_s6 + $0xa8] sm:$0xff] (!%p463_p7)   ;;  %v1730_v50 = vld [vmem:[%s1922_s6 + $0x20] sm:$0xff] (!%p463_p7)  }
  0x30   : > { %1617 = vmatprep.mubr.msk.bf16.mxu0 %vm767_vm2, %v1722_v42  ;;  %1653 = vmatprep.mubr.msk.bf16.mxu1 %vm767_vm2, %v1723_v43  ;;  %v1731_v51 = vld [vmem:[%s1922_s6 + $0xb0] sm:$0xff]   ;;  %v1732_v52 = vld [vmem:[%s1922_s6 + $0x28] sm:$0xff]   ;;  %v1733_v53 = vld [vmem:[%s1922_s6 + $0xb8] sm:$0xff]   ;;  %s2170_s7 = smov (!%p494_p8, %s493_s7), 35 }
  0x31   : > { %v1734_v54 = vld [vmem:[%s1922_s6 + $0x30] sm:$0xff]   ;;  %v1735_v55 = vld [vmem:[%s1922_s6 + $0xc0] sm:$0xff]   ;;  %v1736_v56 = vld [vmem:[%s1922_s6 + $0x38] sm:$0xff]   ;;  %s1460_s10 = sshll.u32 %s2170_s7, 2 }
  0x32   : > { %1618 = vmatmul.mubr.msk.bf16.vlgmr.msra.gmra.mrb[0].mxu0 %vm767_vm2, %v1724_v44  ;;  %1654 = vmatmul.mubr.msk.bf16.vlgmr.msra.gmra.mrb[0].mxu1 %vm767_vm2, %v1725_v45  ;;  %v1737_v57 = vld [vmem:[%s1922_s6 + $0xc8] sm:$0xff]   ;;  %v1738_v58 = vld [vmem:[%s1922_s6 + $0x40] sm:$0xff]   ;;  %v1739_v59 = vld [vmem:[%s1922_s6 + $0xd0] sm:$0xff]   ;;  %s2068_s14 = scalar_lea.vmem %s2165_s3, %s1460_s10 }
  0x33   : > { %1621 = vmatprep.mubr.msk.bf16.mxu0 %vm767_vm2, %v1726_v46  ;;  %1657 = vmatprep.mubr.msk.bf16.mxu1 %vm767_vm2, %v1727_v47  ;;  %v1740_v60 = vld [vmem:[%s1922_s6 + $0x48] sm:$0xff]   ;;  %v1741_v61 = vld [vmem:[%s1922_s6 + $0xd8] sm:$0xff]   ;;  %v1742_v62 = vld [vmem:[%s1922_s6 + $0x50] sm:$0xff]  }
  0x34   : > { %v1743_v63 = vld [vmem:[%s1922_s6 + $0xe0] sm:$0xff]   ;;  %v1744_v0 = vld [vmem:[%s1922_s6 + $0x58] sm:$0xff]   ;;  %v1745_v1 = vld [vmem:[%s1922_s6 + $0xe8] sm:$0xff]  }
  0x35   : > { %v1746_v2 = vld [vmem:[%s1922_s6 + $0x60] sm:$0xff]   ;;  %v1747_v3 = vld [vmem:[%s1922_s6 + $0xf0] sm:$0xff]   ;;  %v1748_v4 = vld [vmem:[%s1922_s6 + $0x68] sm:$0xff]  }
  0x36   : > { %v1749_v5 = vld [vmem:[%s1922_s6 + $0xf8] sm:$0xff]   ;;  %v1750_v6 = vld [vmem:[%s1922_s6 + $0x70] sm:$0xff]   ;;  %v1751_v7 = vld [vmem:[%s1922_s6 + $0x100] sm:$0xff]  }
  0x37   : > { %v1752_v8 = vld [vmem:[%s1922_s6 + $0x78] sm:$0xff]   ;;  %v1753_v9 = vld [vmem:[%s1922_s6 + $0x108] sm:$0xff]   ;;  %v1754_v10 = vld [vmem:[%s1922_s6 + $0x80] sm:$0xff]  }
  0x38   : > { %v1755_v11 = vld [vmem:[%s1922_s6 + $0x110] sm:$0xff]   ;;  %v1756_v12 = vld [vmem:[%s1922_s6 + $0x88] sm:$0xff]   ;;  %v1757_v13 = vld [vmem:[%s1922_s6 + $0x118] sm:$0xff]  }
  0x3a   : > { %1622 = vmatmul.mubr.msk.bf16.gmra.mrb[4].mxu0 %vm767_vm2, %v1728_v48  ;;  %1658 = vmatmul.mubr.msk.bf16.gmra.mrb[4].mxu1 %vm767_vm2, %v1729_v49 }
  0x3b   : > { %1625 = vmatprep.mubr.msk.bf16.mxu0 %vm767_vm2, %v1730_v50  ;;  %1661 = vmatprep.mubr.msk.bf16.mxu1 %vm767_vm2, %v1731_v51 }
  0x42   : > { %1626 = vmatmul.mubr.msk.bf16.gmra.mrb[8].mxu0 %vm767_vm2, %v1732_v52  ;;  %1662 = vmatmul.mubr.msk.bf16.gmra.mrb[8].mxu1 %vm767_vm2, %v1733_v53  ;;  %v2057_v52 = vld [vmem:[%s2164_s2] ss:$0 sm:$0xff] }
  0x43   : > { %1629 = vmatprep.mubr.msk.bf16.mxu0 %vm767_vm2, %v1734_v54  ;;  %1665 = vmatprep.mubr.msk.bf16.mxu1 %vm767_vm2, %v1735_v55 }
  0x4a   : > { %1630 = vmatmul.mubr.msk.bf16.gmra.mrb[12].mxu0 %vm767_vm2, %v1736_v56  ;;  %1666 = vmatmul.mubr.msk.bf16.gmra.mrb[12].mxu1 %vm767_vm2, %v1737_v57 }
  0x4b   : > { %1633 = vmatprep.mubr.msk.bf16.mxu0 %vm767_vm2, %v1738_v58  ;;  %1669 = vmatprep.mubr.msk.bf16.mxu1 %vm767_vm2, %v1739_v59 }
  0x52   : > { %1634 = vmatmul.mubr.msk.bf16.gmra.mrb[16].mxu0 %vm767_vm2, %v1740_v60  ;;  %1670 = vmatmul.mubr.msk.bf16.gmra.mrb[16].mxu1 %vm767_vm2, %v1741_v61 }
  0x53   : > { %1637 = vmatprep.mubr.msk.bf16.mxu0 %vm767_vm2, %v1742_v62  ;;  %1673 = vmatprep.mubr.msk.bf16.mxu1 %vm767_vm2, %v1743_v63 }
  0x5a   : > { %1638 = vmatmul.mubr.msk.bf16.gmra.mrb[20].mxu0 %vm767_vm2, %v1744_v0  ;;  %1674 = vmatmul.mubr.msk.bf16.gmra.mrb[20].mxu1 %vm767_vm2, %v1745_v1 }
  0x5b   : > { %1641 = vmatprep.mubr.msk.bf16.mxu0 %vm767_vm2, %v1746_v2  ;;  %1677 = vmatprep.mubr.msk.bf16.mxu1 %vm767_vm2, %v1747_v3 }
  0x62   : > { %1642 = vmatmul.mubr.msk.bf16.gmra.mrb[24].mxu0 %vm767_vm2, %v1748_v4  ;;  %1678 = vmatmul.mubr.msk.bf16.gmra.mrb[24].mxu1 %vm767_vm2, %v1749_v5 }
  0x63   : > { %1645 = vmatprep.mubr.msk.bf16.mxu0 %vm767_vm2, %v1750_v6  ;;  %1681 = vmatprep.mubr.msk.bf16.mxu1 %vm767_vm2, %v1751_v7 }
  0x6a   : > { %1646 = vmatmul.mubr.msk.bf16.gmra.mrb[28].mxu0 %vm767_vm2, %v1752_v8  ;;  %1682 = vmatmul.mubr.msk.bf16.gmra.mrb[28].mxu1 %vm767_vm2, %v1753_v9 }
  0x6b   : > { %1649 = vmatprep.mubr.msk.bf16.mxu0 %vm767_vm2, %v1754_v10  ;;  %1685 = vmatprep.mubr.msk.bf16.mxu1 %vm767_vm2, %v1755_v11 }
  0x72   : > { %1650 = vmatmul.mubr.msk.bf16.gmra.mrb[32].mxu0 %vm767_vm2, %v1756_v12  ;;  %1686 = vmatmul.mubr.msk.bf16.gmra.mrb[32].mxu1 %vm767_vm2, %v1757_v13 }
 0x105   : > { %v1996_v14 = vpop.f32.mrb[0].mxu0  ;;  %v1998_v15 = vpop.f32.mrb[0].mxu1 }
 0x106   : > { %v917_v16 = vpop.f32.mrb[1].mxu0  ;;  %v1061_v17 = vpop.f32.mrb[1].mxu1 }
 0x107   : > { %v2000_v18 = vpop.f32.mrb[2].mxu0  ;;  %v2002_v19 = vpop.f32.mrb[2].mxu1 }
 0x108   : > { %v920_v20 = vpop.f32.mrb[3].mxu0  ;;  %v1064_v21 = vpop.f32.mrb[3].mxu1 }
 0x10d   : > { %v2004_v22 = vpop.f32.mrb[4].mxu0  ;;  %v2006_v23 = vpop.f32.mrb[4].mxu1 }
 0x10e   : > { %v933_v24 = vpop.f32.mrb[5].mxu0  ;;  %v1077_v25 = vpop.f32.mrb[5].mxu1 }
 0x10f   : > { %v2008_v26 = vpop.f32.mrb[6].mxu0  ;;  %v2010_v27 = vpop.f32.mrb[6].mxu1 }
 0x110   : > { %v2012_v28 = vpop.f32.mrb[7].mxu0  ;;  %v2014_v29 = vpop.f32.mrb[7].mxu1 }
 0x115   : > { %v2016_v30 = vpop.f32.mrb[8].mxu0  ;;  %v2018_v31 = vpop.f32.mrb[8].mxu1 }
 0x116   : > { %v2020_v32 = vpop.f32.mrb[9].mxu0  ;;  %v2022_v33 = vpop.f32.mrb[9].mxu1 }
 0x117   : > { %v2024_v34 = vpop.f32.mrb[10].mxu0  ;;  %v2026_v35 = vpop.f32.mrb[10].mxu1 }
 0x118   : > { %v2028_v36 = vpop.f32.mrb[11].mxu0  ;;  %v2030_v37 = vpop.f32.mrb[11].mxu1 }
 0x11d   : > { %v2032_v38 = vpop.f32.mrb[12].mxu0  ;;  %v2034_v39 = vpop.f32.mrb[12].mxu1 }
 0x11e   : > { %v2036_v40 = vpop.f32.mrb[13].mxu0  ;;  %v2038_v41 = vpop.f32.mrb[13].mxu1 }
 0x11f   : > { %v2042_v42 = vpop.f32.mrb[14].mxu0  ;;  %v2044_v43 = vpop.f32.mrb[14].mxu1 }
 0x120   : > { %v2046_v44 = vpop.f32.mrb[15].mxu0  ;;  %v2048_v45 = vpop.f32.mrb[15].mxu1 }
 0x125   : > { %v1635_v46 = vpop.f32.mrb[16].mxu0  ;;  %v1671_v47 = vpop.f32.mrb[16].mxu1 }
 0x126   : > { %v1204_v48 = vmax.f32 %v917_v16, %v1635_v46  ;;  %v1222_v49 = vmax.f32 %v1061_v17, %v1671_v47  ;;  %v2050_v50 = vpop.f32.mrb[17].mxu0  ;;  %v2052_v51 = vpop.f32.mrb[17].mxu1 }
 0x127   : > { %v1636_v53 = vpop.f32.mrb[18].mxu0  ;;  %v1672_v54 = vpop.f32.mrb[18].mxu1 }
 0x128   : > { %v1240_v55 = vmax.f32 %v1204_v48, %v1222_v49  ;;  %v1205_v56 = vmax.f32 %v920_v20, %v1636_v53  ;;  %v1223_v57 = vmax.f32 %v1064_v21, %v1672_v54  ;;  %v2059_v58 = vpop.f32.mrb[19].mxu0  ;;  %v2061_v59 = vpop.f32.mrb[19].mxu1 }
 0x12a   : > { %v1265_v60 = vadd.f32 %v2057_v52, %v1240_v55  ;;  %v1241_v61 = vmax.f32 %v1205_v56, %v1223_v57 }
 0x12c   : > { %v1283_v62 = vmax.f32 %v1265_v60, 0.0  ;;  %v1266_v63 = vadd.f32 %v2057_v52, %v1241_v61 }
 0x12d   : > { %v1639_v0 = vpop.f32.mrb[20].mxu0  ;;  %v1675_v1 = vpop.f32.mrb[20].mxu1 }
 0x12e   : > { %v1557_v2 = vpack.c.bf16 %v1283_v62, %v1283_v62  ;;  %v1284_v3 = vmax.f32 %v1266_v63, 0.0  ;;  %v1208_v4 = vmax.f32 %v933_v24, %v1639_v0  ;;  %v1226_v5 = vmax.f32 %v1077_v25, %v1675_v1  ;;  %v997_v6 = vpop.f32.mrb[21].mxu0  ;;  %v1141_v7 = vpop.f32.mrb[21].mxu1 }
 0x12f   : > { %v1206_v8 = vmax.f32 %v1996_v14, %v997_v6  ;;  %v1224_v9 = vmax.f32 %v1998_v15, %v1141_v7  ;;  %v1640_v10 = vpop.f32.mrb[22].mxu0  ;;  %v1676_v11 = vpop.f32.mrb[22].mxu1 }
 0x130   : > { %1374 = vst.msk [vmem:[%s2068_s14] sm:$0xf] %vm1373_vm3, %v1557_v2  ;;  %v1558_v12 = vpack.c.bf16 %v1284_v3, %v1284_v3  ;;  %v1244_v13 = vmax.f32 %v1208_v4, %v1226_v5  ;;  %v1209_v16 = vmax.f32 %v2012_v28, %v1640_v10  ;;  %v1227_v17 = vmax.f32 %v2014_v29, %v1676_v11  ;;  %v1000_v20 = vpop.f32.mrb[23].mxu0  ;;  %v1144_v21 = vpop.f32.mrb[23].mxu1 }
 0x131   : > { %v1242_v24 = vmax.f32 %v1206_v8, %v1224_v9  ;;  %v1207_v25 = vmax.f32 %v2000_v18, %v1000_v20  ;;  %v1225_v46 = vmax.f32 %v2002_v19, %v1144_v21 }
 0x132   : > { %1375 = vst.msk [vmem:[%s2068_s14 + $0x4] sm:$0xf] %vm1373_vm3, %v1558_v12  ;;  %v1269_v14 = vadd.f32 %v2057_v52, %v1244_v13  ;;  %v1245_v15 = vmax.f32 %v1209_v16, %v1227_v17 }
 0x133   : > { %v1267_v47 = vadd.f32 %v2057_v52, %v1242_v24  ;;  %v1243_v48 = vmax.f32 %v1207_v25, %v1225_v46 }
 0x134   : > { %v1287_v49 = vmax.f32 %v1269_v14, 0.0  ;;  %v1270_v28 = vadd.f32 %v2057_v52, %v1245_v15 }
 0x135   : > { %v1285_v53 = vmax.f32 %v1267_v47, 0.0  ;;  %v1268_v29 = vadd.f32 %v2057_v52, %v1243_v48  ;;  %v1643_v54 = vpop.f32.mrb[24].mxu0  ;;  %v1679_v55 = vpop.f32.mrb[24].mxu1 }
 0x136   : > { %v1561_v18 = vpack.c.bf16 %v1287_v49, %v1287_v49  ;;  %v1288_v56 = vmax.f32 %v1270_v28, 0.0  ;;  %v1212_v19 = vmax.f32 %v2020_v32, %v1643_v54  ;;  %v1230_v57 = vmax.f32 %v2022_v33, %v1679_v55  ;;  %v1013_v60 = vpop.f32.mrb[25].mxu0  ;;  %v1157_v61 = vpop.f32.mrb[25].mxu1 }
 0x137   : > { %v1559_v62 = vpack.c.bf16 %v1285_v53, %v1285_v53  ;;  %v1286_v63 = vmax.f32 %v1268_v29, 0.0  ;;  %v1210_v0 = vmax.f32 %v2004_v22, %v1013_v60  ;;  %v1228_v1 = vmax.f32 %v2006_v23, %v1157_v61  ;;  %v1644_v2 = vpop.f32.mrb[26].mxu0  ;;  %v1680_v3 = vpop.f32.mrb[26].mxu1 }
 0x138   : > { %1378 = vst.msk [vmem:[%s2068_s14 + $0x10] sm:$0xf] %vm1373_vm3, %v1561_v18  ;;  %v1562_v4 = vpack.c.bf16 %v1288_v56, %v1288_v56  ;;  %v1248_v5 = vmax.f32 %v1212_v19, %v1230_v57  ;;  %v1213_v32 = vmax.f32 %v2028_v36, %v1644_v2  ;;  %v1231_v33 = vmax.f32 %v2030_v37, %v1680_v3  ;;  %v1016_v6 = vpop.f32.mrb[27].mxu0  ;;  %v1160_v7 = vpop.f32.mrb[27].mxu1 }
 0x139   : > { %1376 = vst.msk [vmem:[%s2068_s14 + $0x8] sm:$0xf] %vm1373_vm3, %v1559_v62  ;;  %v1560_v8 = vpack.c.bf16 %v1286_v63, %v1286_v63  ;;  %v1246_v22 = vmax.f32 %v1210_v0, %v1228_v1  ;;  %v1211_v9 = vmax.f32 %v2008_v26, %v1016_v6  ;;  %v1229_v23 = vmax.f32 %v2010_v27, %v1160_v7 }
 0x13a   : > { %1379 = vst.msk [vmem:[%s2068_s14 + $0x14] sm:$0xf] %vm1373_vm3, %v1562_v4  ;;  %v1273_v10 = vadd.f32 %v2057_v52, %v1248_v5  ;;  %v1249_v11 = vmax.f32 %v1213_v32, %v1231_v33 }
 0x13b   : > { %1377 = vst.msk [vmem:[%s2068_s14 + $0xc] sm:$0xf] %vm1373_vm3, %v1560_v8  ;;  %v1271_v36 = vadd.f32 %v2057_v52, %v1246_v22  ;;  %v1247_v37 = vmax.f32 %v1211_v9, %v1229_v23 }
 0x13c   : > { %v1291_v12 = vmax.f32 %v1273_v10, 0.0  ;;  %v1274_v13 = vadd.f32 %v2057_v52, %v1249_v11 }
 0x13d   : > { %v1289_v16 = vmax.f32 %v1271_v36, 0.0  ;;  %v1272_v17 = vadd.f32 %v2057_v52, %v1247_v37  ;;  %v1647_v26 = vpop.f32.mrb[28].mxu0  ;;  %v1683_v20 = vpop.f32.mrb[28].mxu1 }
 0x13e   : > { %v1565_v27 = vpack.c.bf16 %v1291_v12, %v1291_v12  ;;  %v1292_v21 = vmax.f32 %v1274_v13, 0.0  ;;  %v1216_v24 = vmax.f32 %v2036_v40, %v1647_v26  ;;  %v1234_v25 = vmax.f32 %v2038_v41, %v1683_v20  ;;  %v1029_v46 = vpop.f32.mrb[29].mxu0  ;;  %v1173_v14 = vpop.f32.mrb[29].mxu1 }
 0x13f   : > { %v1563_v15 = vpack.c.bf16 %v1289_v16, %v1289_v16  ;;  %v1290_v47 = vmax.f32 %v1272_v17, 0.0  ;;  %v1214_v48 = vmax.f32 %v2016_v30, %v1029_v46  ;;  %v1232_v49 = vmax.f32 %v2018_v31, %v1173_v14  ;;  %v1648_v28 = vpop.f32.mrb[30].mxu0  ;;  %v1684_v53 = vpop.f32.mrb[30].mxu1 }
 0x140   : > { %1382 = vst.msk [vmem:[%s2068_s14 + $0x20] sm:$0xf] %vm1373_vm3, %v1565_v27  ;;  %v1566_v29 = vpack.c.bf16 %v1292_v21, %v1292_v21  ;;  %v1252_v54 = vmax.f32 %v1216_v24, %v1234_v25  ;;  %v1217_v40 = vmax.f32 %v2046_v44, %v1648_v28  ;;  %v1235_v41 = vmax.f32 %v2048_v45, %v1684_v53  ;;  %v1032_v55 = vpop.f32.mrb[31].mxu0  ;;  %v1176_v18 = vpop.f32.mrb[31].mxu1 }
 0x141   : > { %1380 = vst.msk [vmem:[%s2068_s14 + $0x18] sm:$0xf] %vm1373_vm3, %v1563_v15  ;;  %v1564_v56 = vpack.c.bf16 %v1290_v47, %v1290_v47  ;;  %v1250_v30 = vmax.f32 %v1214_v48, %v1232_v49  ;;  %v1215_v19 = vmax.f32 %v2024_v34, %v1032_v55  ;;  %v1233_v31 = vmax.f32 %v2026_v35, %v1176_v18 }
 0x142   : > { %1383 = vst.msk [vmem:[%s2068_s14 + $0x24] sm:$0xf] %vm1373_vm3, %v1566_v29  ;;  %v1277_v57 = vadd.f32 %v2057_v52, %v1252_v54  ;;  %v1253_v60 = vmax.f32 %v1217_v40, %v1235_v41 }
 0x143   : > { %1381 = vst.msk [vmem:[%s2068_s14 + $0x1c] sm:$0xf] %vm1373_vm3, %v1564_v56  ;;  %v1275_v44 = vadd.f32 %v2057_v52, %v1250_v30  ;;  %v1251_v45 = vmax.f32 %v1215_v19, %v1233_v31 }
 0x144   : > { %v1295_v61 = vmax.f32 %v1277_v57, 0.0  ;;  %v1278_v62 = vadd.f32 %v2057_v52, %v1253_v60 }
 0x145   : > { %v1293_v63 = vmax.f32 %v1275_v44, 0.0  ;;  %v1276_v0 = vadd.f32 %v2057_v52, %v1251_v45  ;;  %v1651_v34 = vpop.f32.mrb[32].mxu0  ;;  %v1687_v1 = vpop.f32.mrb[32].mxu1 }
 0x146   : > { %v1569_v35 = vpack.c.bf16 %v1295_v61, %v1295_v61  ;;  %v1296_v2 = vmax.f32 %v1278_v62, 0.0  ;;  %v1220_v3 = vmax.f32 %v2050_v50, %v1651_v34  ;;  %v1238_v4 = vmax.f32 %v2052_v51, %v1687_v1  ;;  %v1045_v5 = vpop.f32.mrb[33].mxu0  ;;  %v1189_v32 = vpop.f32.mrb[33].mxu1 }
 0x147   : > { %v1567_v33 = vpack.c.bf16 %v1293_v63, %v1293_v63  ;;  %v1294_v6 = vmax.f32 %v1276_v0, 0.0  ;;  %v1218_v7 = vmax.f32 %v2032_v38, %v1045_v5  ;;  %v1236_v8 = vmax.f32 %v2034_v39, %v1189_v32  ;;  %v1652_v22 = vpop.f32.mrb[34].mxu0  ;;  %v1688_v9 = vpop.f32.mrb[34].mxu1 }
 0x148   : > { %1386 = vst.msk [vmem:[%s2068_s14 + $0x30] sm:$0xf] %vm1373_vm3, %v1569_v35  ;;  %v1570_v23 = vpack.c.bf16 %v1296_v2, %v1296_v2  ;;  %v1256_v10 = vmax.f32 %v1220_v3, %v1238_v4  ;;  %v1221_v50 = vmax.f32 %v2059_v58, %v1652_v22  ;;  %v1239_v51 = vmax.f32 %v2061_v59, %v1688_v9  ;;  %v1048_v11 = vpop.f32.mrb[35].mxu0  ;;  %v1192_v36 = vpop.f32.mrb[35].mxu1 }
 0x149   : > { %1384 = vst.msk [vmem:[%s2068_s14 + $0x28] sm:$0xf] %vm1373_vm3, %v1567_v33  ;;  %v1568_v37 = vpack.c.bf16 %v1294_v6, %v1294_v6  ;;  %v1254_v38 = vmax.f32 %v1218_v7, %v1236_v8  ;;  %v1219_v12 = vmax.f32 %v2042_v42, %v1048_v11  ;;  %v1237_v39 = vmax.f32 %v2044_v43, %v1192_v36 }
 0x14a   : > { %1387 = vst.msk [vmem:[%s2068_s14 + $0x34] sm:$0xf] %vm1373_vm3, %v1570_v23  ;;  %v1281_v13 = vadd.f32 %v2057_v52, %v1256_v10  ;;  %v1257_v16 = vmax.f32 %v1221_v50, %v1239_v51 }
 0x14b   : > { %1385 = vst.msk [vmem:[%s2068_s14 + $0x2c] sm:$0xf] %vm1373_vm3, %v1568_v37  ;;  %v1279_v58 = vadd.f32 %v2057_v52, %v1254_v38  ;;  %v1255_v59 = vmax.f32 %v1219_v12, %v1237_v39 }
 0x14c   : > { %v1299_v17 = vmax.f32 %v1281_v13, 0.0  ;;  %v1282_v26 = vadd.f32 %v2057_v52, %v1257_v16 }
 0x14d   : > { %v1297_v42 = vmax.f32 %v1279_v58, 0.0  ;;  %v1280_v20 = vadd.f32 %v2057_v52, %v1255_v59 }
 0x14e   : > { %v1573_v43 = vpack.c.bf16 %v1299_v17, %v1299_v17  ;;  %v1300_v27 = vmax.f32 %v1282_v26, 0.0 }
 0x14f   : > { %v1571_v21 = vpack.c.bf16 %v1297_v42, %v1297_v42  ;;  %v1298_v24 = vmax.f32 %v1280_v20, 0.0 }
 0x150   : > { %1390 = vst.msk [vmem:[%s2068_s14 + $0x40] sm:$0xf] %vm1373_vm3, %v1573_v43  ;;  %v1574_v25 = vpack.c.bf16 %v1300_v27, %v1300_v27 }
 0x151   : > { %1388 = vst.msk [vmem:[%s2068_s14 + $0x38] sm:$0xf] %vm1373_vm3, %v1571_v21  ;;  %v1572_v46 = vpack.c.bf16 %v1298_v24, %v1298_v24 }
 0x152   : > { %1391 = vst.msk [vmem:[%s2068_s14 + $0x44] sm:$0xf] %vm1373_vm3, %v1574_v25 }
 0x153   : > { %1389 = vst.msk [vmem:[%s2068_s14 + $0x3c] sm:$0xf] %vm1373_vm3, %v1572_v46 }
 0x154 PF: > { %p10_p9 = scmp.ge.s32.totalorder %s1820_s16, 4   ;;  %s2166_s12 = smov %s1776_s13 }
 0x155   : > { %s2167_s13 = smov %s1829_s19  ;;  %s2168_s14 = smov %s1820_s16 }
 0x156   :  { %12 = sbr.rel (!%p10_p9) target bundleno = 2 (0x2), region = 108 }

// kernel: netconv_forward.4
= control target key start
LH: loop header
LB: loop body
LE: loop exit
PB: predicated region body
PF: predicated region fallthrough
CT: control target
= control target key end

     0   :  { %s1163_s12 = smov 0   ;;  %s1165_s13 = smov 0   ;;  %s1408_s0 = inlined_call_operand.vmem [shape: bf16[4,32,400], index: 0, kind: input, shape index: {}]   ;;  %s1409_s1 = inlined_call_operand.vmem [shape: bf16[400,256], index: 1, kind: input, shape index: {}]   ;;  %s1410_s2 = inlined_call_operand.vmem [shape: f32[1,256], index: 2, kind: input, shape index: {}]   ;;  %s1411_s3 = inlined_call_operand.vmem [shape: bf16[32,256], index: 3, kind: output, shape index: {}]  }
   0x1   :  { %s1167_s14 = smov 0  }
   0x2 LB: > { %s888_s15 = sadd.s32 4294967295, %s1141_s14   ;;  %s1180_s16 = sadd.s32 1, %s1141_s14   ;;  %s1141_s14 = sphi %s1167_s14, %s1414_s14   ;;  %s1137_s13 = sphi %s1165_s13, %s1413_s13   ;;  %s1133_s12 = sphi %s1163_s12, %s1412_s12  }
   0x3   : > { %s17_s17 = ssub.s32 %s1141_s14, %s1180_s16  ;;  %s20_s18 = sadd.s32 1, %s1137_s13 }
   0x4   : > { %p18_p0 = scmp.eq.s32.totalorder %s17_s17, 0  ;;  %p27_p1 = scmp.ne.s32.totalorder %s1137_s13, %s1133_s12 }
   0x5   : > { %p28_p2 = scmp.eq.s32.totalorder %s1141_s14, 0  ;;  %p891_p4 = scmp.ge.s32.totalorder %s1141_s14, 2 }
   0x6   : > { %s1189_s19 = scalar_select %p18_p0, %s1137_s13, %s20_s18  }
   0x7   : > { %p29_p3 = por %p28_p2, %p27_p1  ;;  %127 = sbr.rel (%p891_p4) target bundleno = 26 (0x1a), region = 24 }
   0xe   : > { %130 = sbr.rel (!%p29_p3) target bundleno = 26 (0x1a), region = 28  ;;  %s132_s20 = sand.u32 (%p29_p3), 1, %s1137_s13  }
   0xf   : > { %s976_s21 = sshll.u32 (%p29_p3), %s1141_s14, 5  ;;  %s892_s22 = sshll.u32 (%p29_p3), %s132_s20, 7 }
  0x10   : > { %s1197_s25 = scalar_lea.vmem (%p29_p3), %s1408_s0, %s976_s21  ;;  %s134_s26 = scalar_lea.vmem (%p29_p3), [#allocation2], %s892_s22 }
  0x11   : > { %v151_v0 = vld [vmem:[%s1197_s25] sm:$0xff] (%p29_p3)  ;;  %v153_v1 = vld [vmem:[%s1197_s25 + $0x8] sm:$0xff] (%p29_p3)  ;;  %v155_v2 = vld [vmem:[%s1197_s25 + $0x10] sm:$0xff] (%p29_p3) }
  0x12   : > { %152 = vst [vmem:[%s134_s26] sm:$0xff] (%p29_p3), %v151_v0  ;;  %154 = vst [vmem:[%s134_s26 + $0x8] sm:$0xff] (%p29_p3), %v153_v1  ;;  %v157_v3 = vld [vmem:[%s1197_s25 + $0x18] sm:$0xff] (%p29_p3)  ;;  %v159_v4 = vld [vmem:[%s1197_s25 + $0x40] sm:$0xff] (%p29_p3) }
  0x13   : > { %156 = vst [vmem:[%s134_s26 + $0x10] sm:$0xff] (%p29_p3), %v155_v2  ;;  %v161_v5 = vld [vmem:[%s1197_s25 + $0x48] sm:$0xff] (%p29_p3)  ;;  %158 = vst [vmem:[%s134_s26 + $0x18] sm:$0xff] (%p29_p3), %v157_v3  ;;  %v163_v6 = vld [vmem:[%s1197_s25 + $0x50] sm:$0xff] (%p29_p3) }
  0x14   : > { %160 = vst [vmem:[%s134_s26 + $0x20] sm:$0xff] (%p29_p3), %v159_v4  ;;  %162 = vst [vmem:[%s134_s26 + $0x28] sm:$0xff] (%p29_p3), %v161_v5  ;;  %v165_v7 = vld [vmem:[%s1197_s25 + $0x58] sm:$0xff] (%p29_p3)  ;;  %v167_v8 = vld [vmem:[%s1197_s25 + $0x80] sm:$0xff] (%p29_p3) }
  0x15   : > { %164 = vst [vmem:[%s134_s26 + $0x30] sm:$0xff] %v163_v6  ;;  %166 = vst [vmem:[%s134_s26 + $0x38] sm:$0xff] %v165_v7  ;;  %v169_v9 = vld [vmem:[%s1197_s25 + $0x88] sm:$0xff]  ;;  %v171_v10 = vld [vmem:[%s1197_s25 + $0x90] sm:$0xff] }
  0x16   : > { %168 = vst [vmem:[%s134_s26 + $0x40] sm:$0xff] %v167_v8  ;;  %v173_v11 = vld [vmem:[%s1197_s25 + $0x98] sm:$0xff]  ;;  %170 = vst [vmem:[%s134_s26 + $0x48] sm:$0xff] %v169_v9  ;;  %v175_v12 = vld [vmem:[%s1197_s25 + $0xc0] sm:$0xff] }
  0x17   : > { %172 = vst [vmem:[%s134_s26 + $0x50] sm:$0xff] %v171_v10  ;;  %174 = vst [vmem:[%s134_s26 + $0x58] sm:$0xff] %v173_v11  ;;  %v177_v13 = vld [vmem:[%s1197_s25 + $0xc8] sm:$0xff]  ;;  %v179_v14 = vld [vmem:[%s1197_s25 + $0xd0] sm:$0xff] }
  0x18   : > { %176 = vst [vmem:[%s134_s26 + $0x60] sm:$0xff] %v175_v12  ;;  %178 = vst [vmem:[%s134_s26 + $0x68] sm:$0xff] %v177_v13  ;;  %v181_v15 = vld [vmem:[%s1197_s25 + $0xd8] sm:$0xff] }
  0x19   : > { %180 = vst [vmem:[%s134_s26 + $0x70] sm:$0xff] %v179_v14  ;;  %182 = vst [vmem:[%s134_s26 + $0x78] sm:$0xff] %v181_v15 }
  0x1a PF: > { %p896_p5 = scmp.ge.s32.totalorder %s1141_s14, 1  ;;  %p187_p6 = scmp.lt.s32.totalorder %s1141_s14, 3 }
  0x1c   : > { %p188_p7 = pnand %p896_p5, %p187_p6 }
  0x1d   : > { %v1020_v16 = vld [vmem:[%s1409_s1 + $0x4] ss:$8 sps:$4 sm:$0xff] (!%p188_p7)   ;;  %v1022_v17 = vld [vmem:[%s1409_s1] ss:$8 sps:$4 sm:$0xff] (!%p188_p7)   ;;  %v1023_v18 = vld [vmem:[%s1409_s1 + $0x14] ss:$8 sps:$4 sm:$0xff] (!%p188_p7)  }
  0x1e   : > { %191 = sbr.rel (%p188_p7) target bundleno = 346 (0x15a), region = 51  ;;  %632 = vmatprep.subr.bf16.mxu1 (!%p188_p7), %v1020_v16  ;;  %v1025_v19 = vld [vmem:[%s1409_s1 + $0x10] ss:$8 sps:$4 sm:$0xff] (!%p188_p7)   ;;  %v1026_v20 = vld [vmem:[%s1409_s1 + $0x24] ss:$8 sps:$4 sm:$0xff] (!%p188_p7)   ;;  %s194_s8 = sand.u32 (!%p188_p7), 1, %s1133_s12  }
  0x1f   : > { %633 = vmatpush1.bf16.msra.mxu1 (!%p188_p7), %v1022_v17  ;;  %v1028_v21 = vld [vmem:[%s1409_s1 + $0x20] ss:$8 sps:$4 sm:$0xff] (!%p188_p7)   ;;  %v1029_v22 = vld [vmem:[%s1409_s1 + $0x34] ss:$8 sps:$4 sm:$0xff] (!%p188_p7)   ;;  %v1041_v23 = vld [vmem:[%s1409_s1 + $0x104] ss:$8 sps:$4 sm:$0xff] (!%p188_p7)  }
  0x20   : > { %634 = vmatprep.subr.bf16.mxu1 (!%p188_p7), %v1023_v18  ;;  %v1043_v24 = vld [vmem:[%s1409_s1 + $0x100] ss:$8 sps:$4 sm:$0xff] (!%p188_p7)   ;;  %v1031_v25 = vld [vmem:[%s1409_s1 + $0x30] ss:$8 sps:$4 sm:$0xff] (!%p188_p7)   ;;  %v1032_v26 = vld [vmem:[%s1409_s1 + $0x44] ss:$8 sps:$4 sm:$0xff] (!%p188_p7)   ;;  %705 = vmatprep.subr.bf16.mxu0 (!%p188_p7), %v1041_v23 }
  0x21   : > { %v1047_v27 = vld [vmem:[%s1409_s1 + $0x114] ss:$8 sps:$4 sm:$0xff] (!%p188_p7)   ;;  %706 = vmatpush1.bf16.msra.mxu0 (!%p188_p7), %v1043_v24  ;;  %v1049_v28 = vld [vmem:[%s1409_s1 + $0x110] ss:$8 sps:$4 sm:$0xff] (!%p188_p7)   ;;  %v1034_v29 = vld [vmem:[%s1409_s1 + $0x40] ss:$8 sps:$4 sm:$0xff] (!%p188_p7)  }
  0x22   : > { %707 = vmatprep.subr.bf16.mxu0 (!%p188_p7), %v1047_v27  ;;  %v1053_v30 = vld [vmem:[%s1409_s1 + $0x124] ss:$8 sps:$4 sm:$0xff] (!%p188_p7)   ;;  %v1035_v31 = vld [vmem:[%s1409_s1 + $0x54] ss:$8 sps:$4 sm:$0xff] (!%p188_p7)   ;;  %v1055_v32 = vld [vmem:[%s1409_s1 + $0x120] ss:$8 sps:$4 sm:$0xff] (!%p188_p7)  }
  0x23   : > { %635 = vmatpush1.bf16.msra.mxu1 (!%p188_p7), %v1025_v19  ;;  %v1059_v33 = vld [vmem:[%s1409_s1 + $0x134] ss:$8 sps:$4 sm:$0xff] (!%p188_p7)   ;;  %v1037_v34 = vld [vmem:[%s1409_s1 + $0x50] ss:$8 sps:$4 sm:$0xff] (!%p188_p7)   ;;  %v1038_v35 = vld [vmem:[%s1409_s1 + $0x64] ss:$8 sps:$4 sm:$0xff] (!%p188_p7)  }
  0x24   : > { %636 = vmatprep.subr.bf16.mxu1 (!%p188_p7), %v1026_v20  ;;  %v1061_v36 = vld [vmem:[%s1409_s1 + $0x130] ss:$8 sps:$4 sm:$0xff] (!%p188_p7)   ;;  %v1065_v37 = vld [vmem:[%s1409_s1 + $0x144] ss:$8 sps:$4 sm:$0xff] (!%p188_p7)   ;;  %v1040_v38 = vld [vmem:[%s1409_s1 + $0x60] ss:$8 sps:$4 sm:$0xff] (!%p188_p7)  }
  0x25   : > { %708 = vmatpush1.bf16.msra.mxu0 %v1049_v28  ;;  %v1044_v39 = vld [vmem:[%s1409_s1 + $0x74] ss:$8 sps:$4 sm:$0xff]   ;;  %v1067_v40 = vld [vmem:[%s1409_s1 + $0x140] ss:$8 sps:$4 sm:$0xff]   ;;  %v1046_v42 = vld [vmem:[%s1409_s1 + $0x70] ss:$8 sps:$4 sm:$0xff]  }
  0x26   : > { %709 = vmatprep.subr.bf16.mxu0 %v1053_v30  ;;  %v1071_v41 = vld [vmem:[%s1409_s1 + $0x154] ss:$8 sps:$4 sm:$0xff]   ;;  %v1050_v43 = vld [vmem:[%s1409_s1 + $0x84] ss:$8 sps:$4 sm:$0xff]   ;;  %s897_s21 = sshll.u32 %s194_s8, 7  ;;  %vm619_vm0 = vcmask 130048  }
  0x27   : > { %637 = vmatpush1.bf16.msra.mxu1 %v1028_v21  ;;  %v1073_v44 = vld [vmem:[%s1409_s1 + $0x150] ss:$8 sps:$4 sm:$0xff]   ;;  %v1077_v45 = vld [vmem:[%s1409_s1 + $0x164] ss:$8 sps:$4 sm:$0xff]   ;;  %v1052_v46 = vld [vmem:[%s1409_s1 + $0x80] ss:$8 sps:$4 sm:$0xff]  }
  0x28   : > { %638 = vmatprep.subr.bf16.mxu1 %v1029_v22  ;;  %v1056_v47 = vld [vmem:[%s1409_s1 + $0x94] ss:$8 sps:$4 sm:$0xff]   ;;  %v1079_v48 = vld [vmem:[%s1409_s1 + $0x160] ss:$8 sps:$4 sm:$0xff]   ;;  %s1317_s4 = scalar_lea.vmem [#allocation2], %s897_s21 }
  0x29   : > { %710 = vmatpush1.bf16.msra.mxu0 %v1055_v32  ;;  %v1083_v49 = vld [vmem:[%s1409_s1 + $0x174] ss:$8 sps:$4 sm:$0xff]   ;;  %v1058_v51 = vld [vmem:[%s1409_s1 + $0x90] ss:$8 sps:$4 sm:$0xff]   ;;  %v1062_v53 = vld [vmem:[%s1409_s1 + $0xa4] ss:$8 sps:$4 sm:$0xff]  }
  0x2a   : > { %711 = vmatprep.subr.bf16.mxu0 %v1059_v33  ;;  %v1096_v50 = vld [vmem:[%s1317_s4 + $0xc] ss:$16 sps:$4 sm:$0xff]   ;;  %v1100_v52 = vld [vmem:[%s1317_s4 + $0x4] ss:$16 sps:$4 sm:$0xff]   ;;  %v1085_v54 = vld [vmem:[%s1409_s1 + $0x170] ss:$8 sps:$4 sm:$0xff]  }
  0x2b   : > { %639 = vmatpush1.bf16.msra.mxu1 %v1031_v25  ;;  %967 = vmatprep.mubr.msk.bf16.mxu0 %vm619_vm0, %v1096_v50  ;;  %v1089_v55 = vld [vmem:[%s1409_s1 + $0x184] ss:$8 sps:$4 sm:$0xff]   ;;  %v1064_v56 = vld [vmem:[%s1409_s1 + $0xa0] ss:$8 sps:$4 sm:$0xff]   ;;  %v1068_v57 = vld [vmem:[%s1409_s1 + $0xb4] ss:$8 sps:$4 sm:$0xff]  }
  0x2c   : > { %640 = vmatprep.subr.bf16.mxu1 %v1032_v26  ;;  %664 = vmatprep.mubr.bf16.mxu1 %v1100_v52  ;;  %v1091_v58 = vld [vmem:[%s1409_s1 + $0x180] ss:$8 sps:$4 sm:$0xff]   ;;  %v1070_v59 = vld [vmem:[%s1409_s1 + $0xb0] ss:$8 sps:$4 sm:$0xff]   ;;  %v1074_v60 = vld [vmem:[%s1409_s1 + $0xc4] ss:$8 sps:$4 sm:$0xff]  }
  0x2d   : > { %712 = vmatpush1.bf16.msra.mxu0 %v1061_v36  ;;  %v1094_v61 = vld [vmem:[%s1317_s4 + $0x8] ss:$16 sps:$4 sm:$0xff]   ;;  %v1101_v62 = vld [vmem:[%s1317_s4 + $0x2c] ss:$16 sps:$4 sm:$0xff]   ;;  %v1098_v10 = vld [vmem:[%s1317_s4] ss:$16 sps:$4 sm:$0xff]  }
  0x2e   : > { %713 = vmatprep.subr.bf16.mxu0 %v1065_v37  ;;  %v1076_v63 = vld [vmem:[%s1409_s1 + $0xc0] ss:$8 sps:$4 sm:$0xff]   ;;  %v1080_v0 = vld [vmem:[%s1409_s1 + $0xd4] ss:$8 sps:$4 sm:$0xff]   ;;  %v1082_v1 = vld [vmem:[%s1409_s1 + $0xd0] ss:$8 sps:$4 sm:$0xff]  }
  0x2f   : > { %641 = vmatpush1.bf16.msra.mxu1 %v1034_v29  ;;  %v1086_v2 = vld [vmem:[%s1409_s1 + $0xe4] ss:$8 sps:$4 sm:$0xff]   ;;  %v1103_v3 = vld [vmem:[%s1317_s4 + $0x28] ss:$16 sps:$4 sm:$0xff]   ;;  %v1092_v6 = vld [vmem:[%s1409_s1 + $0xf4] ss:$8 sps:$4 sm:$0xff]  }
  0x30   : > { %642 = vmatprep.subr.bf16.mxu1 %v1035_v31  ;;  %v1107_v4 = vld [vmem:[%s1317_s4 + $0x4c] ss:$16 sps:$4 sm:$0xff]   ;;  %v1088_v5 = vld [vmem:[%s1409_s1 + $0xe0] ss:$8 sps:$4 sm:$0xff]   ;;  %v1097_v7 = vld [vmem:[%s1409_s1 + $0xf0] ss:$8 sps:$4 sm:$0xff]  }
  0x31   : > { %714 = vmatpush1.bf16.msra.mxu0 %v1067_v40  ;;  %v1109_v8 = vld [vmem:[%s1317_s4 + $0x48] ss:$16 sps:$4 sm:$0xff]   ;;  %v1113_v9 = vld [vmem:[%s1317_s4 + $0x6c] ss:$16 sps:$4 sm:$0xff]   ;;  %v1104_v11 = vld [vmem:[%s1317_s4 + $0x24] ss:$16 sps:$4 sm:$0xff]  }
  0x32   : > { %715 = vmatprep.subr.bf16.mxu0 %v1071_v41  ;;  %v1115_v12 = vld [vmem:[%s1317_s4 + $0x68] ss:$16 sps:$4 sm:$0xff]   ;;  %v1106_v13 = vld [vmem:[%s1317_s4 + $0x20] ss:$16 sps:$4 sm:$0xff]   ;;  %v1110_v14 = vld [vmem:[%s1317_s4 + $0x44] ss:$16 sps:$4 sm:$0xff]  }
  0x33   : > { %643 = vmatpush1.bf16.msra.mxu1 %v1037_v34  ;;  %v1112_v15 = vld [vmem:[%s1317_s4 + $0x40] ss:$16 sps:$4 sm:$0xff]   ;;  %v1116_v16 = vld [vmem:[%s1317_s4 + $0x64] ss:$16 sps:$4 sm:$0xff]  }
  0x34   : > { %644 = vmatprep.subr.bf16.mxu1 %v1038_v35  ;;  %v1118_v17 = vld [vmem:[%s1317_s4 + $0x60] ss:$16 sps:$4 sm:$0xff]   ;;  %s898_s4 = sshll.u32 %s888_s15, 1 }
  0x35   : > { %716 = vmatpush1.bf16.msra.mxu0 %v1073_v44  ;;  %p220_p8 = scmp.lt.s32.totalorder %s898_s4, 3 }
  0x36   : > { %717 = vmatprep.subr.bf16.mxu0 %v1077_v45 }
  0x37   : > { %645 = vmatpush1.bf16.msra.mxu1 %v1040_v38  ;;  %s1416_s4 = smov (!%p220_p8, %s898_s4), 3 }
  0x38   : > { %646 = vmatprep.subr.bf16.mxu1 %v1044_v39  ;;  %s977_s14 = sshll.u32 %s1416_s4, 3 }
  0x39   : > { %718 = vmatpush1.bf16.msra.mxu0 %v1079_v48  ;;  %s224_s26 = scalar_lea.vmem %s1411_s3, %s977_s14 }
  0x3a   : > { %719 = vmatprep.subr.bf16.mxu0 %v1083_v49 }
  0x3b   : > { %647 = vmatpush1.bf16.msra.mxu1 %v1046_v42 }
  0x3c   : > { %648 = vmatprep.subr.bf16.mxu1 %v1050_v43 }
  0x3d   : > { %720 = vmatpush1.bf16.msra.mxu0 %v1085_v54  ;;  %v792_v54 = vlaneseq }
  0x3e   : > { %721 = vmatprep.subr.bf16.mxu0 %v1089_v55 }
  0x3f   : > { %649 = vmatpush1.bf16.msra.mxu1 %v1052_v46 }
  0x40   : > { %650 = vmatprep.subr.bf16.mxu1 %v1056_v47 }
  0x41   : > { %722 = vmatpush1.bf16.msra.mxu0 %v1091_v58 }
  0x43   : > { %651 = vmatpush1.bf16.msra.mxu1 %v1058_v51 }
  0x44   : > { %652 = vmatprep.subr.bf16.mxu1 %v1062_v53  ;;  %738 = vmatmul.mubr.bf16.vlgmr.msra.gmra.mrb[0].mxu0 %v1094_v61 }
  0x45   : > { %968 = vmatprep.mubr.msk.bf16.mxu0 %vm619_vm0, %v1101_v62  ;;  %v793_v62 = vshrl.u32 %v792_v54, 7 }
  0x47   : > { %653 = vmatpush1.bf16.msra.mxu1 %v1064_v56 }
  0x48   : > { %654 = vmatprep.subr.bf16.mxu1 %v1068_v57 }
  0x4b   : > { %655 = vmatpush1.bf16.msra.mxu1 %v1070_v59 }
  0x4c   : > { %656 = vmatprep.subr.bf16.mxu1 %v1074_v60  ;;  %748 = vmatmul.mubr.bf16.gmra.mrb[4].mxu0 %v1103_v3  ;;  %v798_v3 = vsub.s32 1, %v793_v62 }
  0x4d   : > { %969 = vmatprep.mubr.msk.bf16.mxu0 %vm619_vm0, %v1107_v4 }
  0x4f   : > { %657 = vmatpush1.bf16.msra.mxu1 %v1076_v63 }
  0x50   : > { %658 = vmatprep.subr.bf16.mxu1 %v1080_v0  ;;  %v794_v0 = vsub.s32 0, %v793_v62 }
  0x53   : > { %659 = vmatpush1.bf16.msra.mxu1 %v1082_v1 }
  0x54   : > { %660 = vmatprep.subr.bf16.mxu1 %v1086_v2  ;;  %758 = vmatmul.mubr.bf16.gmra.mrb[8].mxu0 %v1109_v8  ;;  %v790_v2 = vld [vmem:[%s1410_s2] sm:$0x3] }
  0x55   : > { %970 = vmatprep.mubr.msk.bf16.mxu0 %vm619_vm0, %v1113_v9  ;;  %v795_v9 = vrot.slane %v790_v2, %v794_v0 }
  0x57   : > { %661 = vmatpush1.bf16.msra.mxu1 %v1088_v5 }
  0x58   : > { %662 = vmatprep.subr.bf16.mxu1 %v1092_v6 }
  0x5b   : > { %663 = vmatpush1.bf16.msra.mxu1 %v1097_v7 }
  0x5c   : > { %768 = vmatmul.mubr.bf16.gmra.mrb[12].mxu0 %v1115_v12 }
  0x5e   : > { %665 = vmatmul.mubr.bf16.vlgmr.msra.gmra.mrb[0].mxu1 %v1098_v10 }
  0x5f   : > { %674 = vmatprep.mubr.bf16.mxu1 %v1104_v11 }
  0x66   : > { %675 = vmatmul.mubr.bf16.gmra.mrb[4].mxu1 %v1106_v13  ;;  %v799_v13 = vrot.slane %v790_v2, %v798_v3 }
  0x67   : > { %684 = vmatprep.mubr.bf16.mxu1 %v1110_v14 }
  0x6e   : > { %685 = vmatmul.mubr.bf16.gmra.mrb[8].mxu1 %v1112_v15 }
  0x6f   : > { %694 = vmatprep.mubr.bf16.mxu1 %v1116_v16 }
  0x76   : > { %695 = vmatmul.mubr.bf16.gmra.mrb[12].mxu1 %v1118_v17 }
 0x117   : > { %v739_v18 = vpop.f32.mrb[0].mxu0 }
 0x118   : > { %v741_v19 = vpop.f32.mrb[1].mxu0 }
 0x119   : > { %v743_v20 = vpop.f32.mrb[2].mxu0 }
 0x11a   : > { %v745_v21 = vpop.f32.mrb[3].mxu0 }
 0x11f   : > { %v749_v22 = vpop.f32.mrb[4].mxu0 }
 0x120   : > { %v751_v23 = vpop.f32.mrb[5].mxu0 }
 0x121   : > { %v753_v24 = vpop.f32.mrb[6].mxu0 }
 0x122   : > { %v755_v25 = vpop.f32.mrb[7].mxu0 }
 0x127   : > { %v759_v26 = vpop.f32.mrb[8].mxu0 }
 0x128   : > { %v761_v27 = vpop.f32.mrb[9].mxu0 }
 0x129   : > { %v763_v29 = vpop.f32.mrb[10].mxu0 }
 0x12a   : > { %v765_v32 = vpop.f32.mrb[11].mxu0 }
 0x12f   : > { %v769_v38 = vpop.f32.mrb[12].mxu0 }
 0x130   : > { %v771_v39 = vpop.f32.mrb[13].mxu0 }
 0x131   : > { %v666_v28 = vpop.f32.mrb[0].mxu1  ;;  %v773_v41 = vpop.f32.mrb[14].mxu0 }
 0x132   : > { %v740_v30 = vadd.f32 %v739_v18, %v666_v28  ;;  %v668_v31 = vpop.f32.mrb[1].mxu1  ;;  %v775_v44 = vpop.f32.mrb[15].mxu0 }
 0x133   : > { %v742_v33 = vadd.f32 %v741_v19, %v668_v31  ;;  %v670_v34 = vpop.f32.mrb[2].mxu1 }
 0x134   : > { %v744_v35 = vadd.f32 %v743_v20, %v670_v34  ;;  %v672_v36 = vpop.f32.mrb[3].mxu1 }
 0x135   : > { %v746_v37 = vadd.f32 %v745_v21, %v672_v36 }
 0x139   : > { %v676_v40 = vpop.f32.mrb[4].mxu1 }
 0x13a   : > { %v750_v42 = vadd.f32 %v749_v22, %v676_v40  ;;  %v678_v43 = vpop.f32.mrb[5].mxu1 }
 0x13b   : > { %v752_v45 = vadd.f32 %v751_v23, %v678_v43  ;;  %v680_v46 = vpop.f32.mrb[6].mxu1 }
 0x13c   : > { %v778_v47 = vmax.f32 %v740_v30, %v750_v42  ;;  %v754_v48 = vadd.f32 %v753_v24, %v680_v46  ;;  %v682_v49 = vpop.f32.mrb[7].mxu1 }
 0x13d   : > { %v779_v50 = vmax.f32 %v742_v33, %v752_v45  ;;  %v756_v51 = vadd.f32 %v755_v25, %v682_v49 }
 0x13e   : > { %v780_v52 = vmax.f32 %v744_v35, %v754_v48 }
 0x13f   : > { %v781_v53 = vmax.f32 %v746_v37, %v756_v51 }
 0x141   : > { %v686_v55 = vpop.f32.mrb[8].mxu1 }
 0x142   : > { %v760_v56 = vadd.f32 %v759_v26, %v686_v55  ;;  %v688_v57 = vpop.f32.mrb[9].mxu1 }
 0x143   : > { %v762_v58 = vadd.f32 %v761_v27, %v688_v57  ;;  %v690_v59 = vpop.f32.mrb[10].mxu1 }
 0x144   : > { %v764_v60 = vadd.f32 %v763_v29, %v690_v59  ;;  %v692_v61 = vpop.f32.mrb[11].mxu1 }
 0x145   : > { %v766_v63 = vadd.f32 %v765_v32, %v692_v61 }
 0x149   : > { %v696_v1 = vpop.f32.mrb[12].mxu1 }
 0x14a   : > { %v770_v4 = vadd.f32 %v769_v38, %v696_v1  ;;  %v698_v5 = vpop.f32.mrb[13].mxu1 }
 0x14b   : > { %v772_v6 = vadd.f32 %v771_v39, %v698_v5  ;;  %v700_v7 = vpop.f32.mrb[14].mxu1 }
 0x14c   : > { %v782_v8 = vmax.f32 %v760_v56, %v770_v4  ;;  %v774_v10 = vadd.f32 %v773_v41, %v700_v7  ;;  %v702_v11 = vpop.f32.mrb[15].mxu1 }
 0x14d   : > { %v783_v12 = vmax.f32 %v762_v58, %v772_v6  ;;  %v776_v14 = vadd.f32 %v775_v44, %v702_v11 }
 0x14e   : > { %v786_v15 = vmax.f32 %v778_v47, %v782_v8  ;;  %v784_v16 = vmax.f32 %v764_v60, %v774_v10 }
 0x14f   : > { %v787_v17 = vmax.f32 %v779_v50, %v783_v12  ;;  %v785_v18 = vmax.f32 %v766_v63, %v776_v14 }
 0x150   : > { %v802_v19 = vadd.f32 %v795_v9, %v786_v15  ;;  %v788_v20 = vmax.f32 %v780_v52, %v784_v16 }
 0x151   : > { %v803_v21 = vadd.f32 %v799_v13, %v787_v17  ;;  %v789_v22 = vmax.f32 %v781_v53, %v785_v18 }
 0x152   : > { %v806_v23 = vmax.f32 %v802_v19, 0.0  ;;  %v804_v24 = vadd.f32 %v795_v9, %v788_v20 }
 0x153   : > { %v807_v25 = vmax.f32 %v803_v21, 0.0  ;;  %v805_v26 = vadd.f32 %v799_v13, %v789_v22 }
 0x154   : > { %v808_v27 = vmax.f32 %v804_v24, 0.0 }
 0x155   : > { %v978_v28 = vpack.c.bf16 %v807_v25, %v806_v23  ;;  %v809_v29 = vmax.f32 %v805_v26, 0.0 }
 0x157   : > { %822 = vst [vmem:[%s224_s26] sm:$0xff] %v978_v28  ;;  %v979_v30 = vpack.c.bf16 %v809_v29, %v808_v27 }
 0x159   : > { %823 = vst [vmem:[%s224_s26 + $0x8] sm:$0xff] %v979_v30 }
 0x15a PF: > { %p10_p9 = scmp.ge.s32.totalorder %s1180_s16, 4   ;;  %s1412_s12 = smov %s1137_s13 }
 0x15b   : > { %s1413_s13 = smov %s1189_s19  ;;  %s1414_s14 = smov %s1180_s16 }
 0x15c   :  { %12 = sbr.rel (!%p10_p9) target bundleno = 2 (0x2), region = 90 }

// kernel: netconv_forward.5
= control target key start
LH: loop header
LB: loop body
LE: loop exit
PB: predicated region body
PF: predicated region fallthrough
CT: control target
= control target key end

     0   :  { %vm2838_vm0 = vcmask 80896   ;;  %s4635_s1 = inlined_call_operand.vmem [shape: bf16[4096,10], index: 1, kind: input, shape index: {}]   ;;  %s4636_s0 = inlined_call_operand.vmem [shape: bf16[8,4096], index: 0, kind: input, shape index: {}]   ;;  %s4637_s2 = inlined_call_operand.vmem [shape: f32[1,10], index: 2, kind: input, shape index: {}]   ;;  %s4638_s3 = inlined_call_operand.vmem [shape: f32[8,10], index: 3, kind: output, shape index: {}]  }
   0x1   :  { %v3498_v0 = vld [vmem:[%s4635_s1 + $0x40] sm:$0xff]   ;;  %v3502_v4 = vld [vmem:[%s4635_s1 + $0x48] sm:$0xff]   ;;  %v3506_v8 = vld [vmem:[%s4635_s1 + $0x50] sm:$0xff]  }
   0x2   :  { %v3499_v1 = vld [vmem:[%s4635_s1 + $0xc0] sm:$0xff]   ;;  %3146 = vmatprep.subr.bf16.mxu0 %v3498_v0  ;;  %v3503_v5 = vld [vmem:[%s4635_s1 + $0xc8] sm:$0xff]   ;;  %v3507_v9 = vld [vmem:[%s4635_s1 + $0xd0] sm:$0xff]  }
   0x3   :  { %v3500_v2 = vld [vmem:[%s4635_s1] sm:$0xff]   ;;  %3168 = vmatprep.subr.bf16.mxu1 %v3499_v1  ;;  %v3504_v6 = vld [vmem:[%s4635_s1 + $0x8] sm:$0xff]   ;;  %v3508_v10 = vld [vmem:[%s4635_s1 + $0x10] sm:$0xff]  }
   0x4   :  { %v3501_v3 = vld [vmem:[%s4635_s1 + $0x80] sm:$0xff]   ;;  %3147 = vmatpush3.bf16.msra.mxu0 %v3500_v2  ;;  %v3505_v7 = vld [vmem:[%s4635_s1 + $0x88] sm:$0xff]   ;;  %v3509_v11 = vld [vmem:[%s4635_s1 + $0x90] sm:$0xff]  }
   0x5   :  { %3169 = vmatpush3.bf16.msra.mxu1 %v3501_v3  ;;  %3148 = vmatprep.subr.bf16.mxu0 %v3502_v4  ;;  %v3510_v12 = vld [vmem:[%s4635_s1 + $0x58] sm:$0xff]   ;;  %v3514_v16 = vld [vmem:[%s4635_s1 + $0x60] sm:$0xff]   ;;  %v3518_v20 = vld [vmem:[%s4635_s1 + $0x68] sm:$0xff]  }
   0x6   :  { %3170 = vmatprep.subr.bf16.mxu1 %v3503_v5  ;;  %v3511_v13 = vld [vmem:[%s4635_s1 + $0xd8] sm:$0xff]   ;;  %v3515_v17 = vld [vmem:[%s4635_s1 + $0xe0] sm:$0xff]   ;;  %v3519_v21 = vld [vmem:[%s4635_s1 + $0xe8] sm:$0xff]  }
   0x7   :  { %v3512_v14 = vld [vmem:[%s4635_s1 + $0x18] sm:$0xff]   ;;  %v3516_v18 = vld [vmem:[%s4635_s1 + $0x20] sm:$0xff]   ;;  %v3520_v22 = vld [vmem:[%s4635_s1 + $0x28] sm:$0xff]  }
   0x8   :  { %3149 = vmatpush3.bf16.msra.mxu0 %v3504_v6  ;;  %v3513_v15 = vld [vmem:[%s4635_s1 + $0x98] sm:$0xff]   ;;  %v3517_v19 = vld [vmem:[%s4635_s1 + $0xa0] sm:$0xff]   ;;  %v3521_v23 = vld [vmem:[%s4635_s1 + $0xa8] sm:$0xff]  }
   0x9   :  { %3171 = vmatpush3.bf16.msra.mxu1 %v3505_v7  ;;  %3150 = vmatprep.subr.bf16.mxu0 %v3506_v8  ;;  %v3522_v24 = vld [vmem:[%s4635_s1 + $0x70] sm:$0xff]   ;;  %v3526_v28 = vld [vmem:[%s4635_s1 + $0x78] sm:$0xff]   ;;  %v15_v32 = vld [vmem:[%s4636_s0] sm:$0xff] }
   0xa   :  { %3172 = vmatprep.subr.bf16.mxu1 %v3507_v9  ;;  %v3523_v25 = vld [vmem:[%s4635_s1 + $0xf0] sm:$0xff]   ;;  %v3527_v29 = vld [vmem:[%s4635_s1 + $0xf8] sm:$0xff]   ;;  %v16_v33 = vld [vmem:[%s4636_s0 + $0x8] sm:$0xff]  ;;  %v2858_v34 = vcombine.low %v15_v32, %v15_v32  ;;  %v2859_v35 = vcombine.high %v15_v32, %v15_v32 }
   0xb   :  { %v3524_v26 = vld [vmem:[%s4635_s1 + $0x30] sm:$0xff]   ;;  %v3528_v30 = vld [vmem:[%s4635_s1 + $0x38] sm:$0xff]   ;;  %v2860_v36 = vcombine.low %v16_v33, %v16_v33  ;;  %v2861_v37 = vcombine.high %v16_v33, %v16_v33  ;;  %v3534_v38 = vld [vmem:[%s4635_s1 + $0x140] sm:$0xff]  }
   0xc   :  { %3151 = vmatpush3.bf16.msra.mxu0 %v3508_v10  ;;  %v3525_v27 = vld [vmem:[%s4635_s1 + $0xb0] sm:$0xff]   ;;  %v3529_v31 = vld [vmem:[%s4635_s1 + $0xb8] sm:$0xff]   ;;  %v3535_v39 = vld [vmem:[%s4635_s1 + $0x1c0] sm:$0xff]   ;;  %2230 = vmatprep.mubr.bf16.mxu0 %v2859_v35 }
   0xd   :  { %3173 = vmatpush3.bf16.msra.mxu1 %v3509_v11  ;;  %3152 = vmatprep.subr.bf16.mxu0 %v3510_v12  ;;  %v3536_v40 = vld [vmem:[%s4635_s1 + $0x100] sm:$0xff]   ;;  %v3538_v42 = vld [vmem:[%s4635_s1 + $0x148] sm:$0xff]   ;;  %v3542_v46 = vld [vmem:[%s4635_s1 + $0x150] sm:$0xff]  }
   0xe   :  { %3174 = vmatprep.subr.bf16.mxu1 %v3511_v13  ;;  %2270 = vmatprep.mubr.bf16.mxu1 %v2861_v37  ;;  %v3537_v41 = vld [vmem:[%s4635_s1 + $0x180] sm:$0xff]   ;;  %v3539_v43 = vld [vmem:[%s4635_s1 + $0x1c8] sm:$0xff]   ;;  %v3543_v47 = vld [vmem:[%s4635_s1 + $0x1d0] sm:$0xff]  }
   0xf   :  { %v3540_v44 = vld [vmem:[%s4635_s1 + $0x108] sm:$0xff]   ;;  %v3544_v48 = vld [vmem:[%s4635_s1 + $0x110] sm:$0xff]   ;;  %v3546_v50 = vld [vmem:[%s4635_s1 + $0x158] sm:$0xff]  }
  0x10   :  { %3153 = vmatpush3.bf16.msra.mxu0 %v3512_v14  ;;  %v3541_v45 = vld [vmem:[%s4635_s1 + $0x188] sm:$0xff]   ;;  %v3545_v49 = vld [vmem:[%s4635_s1 + $0x190] sm:$0xff]   ;;  %v3547_v51 = vld [vmem:[%s4635_s1 + $0x1d8] sm:$0xff]  }
  0x11   :  { %3175 = vmatpush3.bf16.msra.mxu1 %v3513_v15  ;;  %3154 = vmatprep.subr.bf16.mxu0 %v3514_v16  ;;  %v3548_v52 = vld [vmem:[%s4635_s1 + $0x118] sm:$0xff]   ;;  %v3550_v54 = vld [vmem:[%s4635_s1 + $0x160] sm:$0xff]   ;;  %v3554_v58 = vld [vmem:[%s4635_s1 + $0x168] sm:$0xff]  }
  0x12   :  { %3176 = vmatprep.subr.bf16.mxu1 %v3515_v17  ;;  %v3549_v53 = vld [vmem:[%s4635_s1 + $0x198] sm:$0xff]   ;;  %v3551_v55 = vld [vmem:[%s4635_s1 + $0x1e0] sm:$0xff]   ;;  %v3555_v59 = vld [vmem:[%s4635_s1 + $0x1e8] sm:$0xff]  }
  0x13   :  { %v3552_v56 = vld [vmem:[%s4635_s1 + $0x120] sm:$0xff]   ;;  %v3556_v60 = vld [vmem:[%s4635_s1 + $0x128] sm:$0xff]   ;;  %v3558_v62 = vld [vmem:[%s4635_s1 + $0x170] sm:$0xff]  }
  0x14   :  { %3155 = vmatpush3.bf16.msra.mxu0 %v3516_v18  ;;  %v3553_v57 = vld [vmem:[%s4635_s1 + $0x1a0] sm:$0xff]   ;;  %v3557_v61 = vld [vmem:[%s4635_s1 + $0x1a8] sm:$0xff]   ;;  %v3559_v63 = vld [vmem:[%s4635_s1 + $0x1f0] sm:$0xff]  }
  0x15   :  { %3177 = vmatpush3.bf16.msra.mxu1 %v3517_v19  ;;  %3156 = vmatprep.subr.bf16.mxu0 %v3518_v20  ;;  %v3560_v0 = vld [vmem:[%s4635_s1 + $0x130] sm:$0xff]   ;;  %v3562_v2 = vld [vmem:[%s4635_s1 + $0x178] sm:$0xff]   ;;  %v3570_v12 = vld [vmem:[%s4635_s1 + $0x240] sm:$0xff]  }
  0x16   :  { %3178 = vmatprep.subr.bf16.mxu1 %v3519_v21  ;;  %v3561_v1 = vld [vmem:[%s4635_s1 + $0x1b0] sm:$0xff]   ;;  %v3563_v3 = vld [vmem:[%s4635_s1 + $0x1f8] sm:$0xff]   ;;  %v3571_v13 = vld [vmem:[%s4635_s1 + $0x2c0] sm:$0xff]  }
  0x17   :  { %v3564_v4 = vld [vmem:[%s4635_s1 + $0x138] sm:$0xff]   ;;  %v17_v6 = vld [vmem:[%s4636_s0 + $0x10] sm:$0xff]  ;;  %v3572_v14 = vld [vmem:[%s4635_s1 + $0x200] sm:$0xff]  }
  0x18   :  { %3157 = vmatpush3.bf16.msra.mxu0 %v3520_v22  ;;  %v3565_v5 = vld [vmem:[%s4635_s1 + $0x1b8] sm:$0xff]   ;;  %v2862_v7 = vcombine.low %v17_v6, %v17_v6  ;;  %v2863_v8 = vcombine.high %v17_v6, %v17_v6  ;;  %v3573_v15 = vld [vmem:[%s4635_s1 + $0x280] sm:$0xff]   ;;  %v3574_v16 = vld [vmem:[%s4635_s1 + $0x248] sm:$0xff]  }
  0x19   :  { %3179 = vmatpush3.bf16.msra.mxu1 %v3521_v23  ;;  %3158 = vmatprep.subr.bf16.mxu0 %v3522_v24  ;;  %v18_v9 = vld [vmem:[%s4636_s0 + $0x18] sm:$0xff]  ;;  %v3575_v17 = vld [vmem:[%s4635_s1 + $0x2c8] sm:$0xff]   ;;  %v3578_v20 = vld [vmem:[%s4635_s1 + $0x250] sm:$0xff]  }
  0x1a   :  { %3180 = vmatprep.subr.bf16.mxu1 %v3523_v25  ;;  %v2864_v10 = vcombine.low %v18_v9, %v18_v9  ;;  %v2865_v11 = vcombine.high %v18_v9, %v18_v9  ;;  %v3576_v18 = vld [vmem:[%s4635_s1 + $0x208] sm:$0xff]   ;;  %v3579_v21 = vld [vmem:[%s4635_s1 + $0x2d0] sm:$0xff]   ;;  %v3582_v24 = vld [vmem:[%s4635_s1 + $0x258] sm:$0xff]  }
  0x1b   :  { %v3577_v19 = vld [vmem:[%s4635_s1 + $0x288] sm:$0xff]   ;;  %v3580_v22 = vld [vmem:[%s4635_s1 + $0x210] sm:$0xff]   ;;  %v3583_v25 = vld [vmem:[%s4635_s1 + $0x2d8] sm:$0xff]  }
  0x1c   :  { %3159 = vmatpush3.bf16.msra.mxu0 %v3524_v26  ;;  %v3581_v23 = vld [vmem:[%s4635_s1 + $0x290] sm:$0xff]   ;;  %v3584_v26 = vld [vmem:[%s4635_s1 + $0x218] sm:$0xff]   ;;  %v3590_v32 = vld [vmem:[%s4635_s1 + $0x268] sm:$0xff]  }
  0x1d   :  { %3181 = vmatpush3.bf16.msra.mxu1 %v3525_v27  ;;  %3160 = vmatprep.subr.bf16.mxu0 %v3526_v28  ;;  %v3585_v27 = vld [vmem:[%s4635_s1 + $0x298] sm:$0xff]   ;;  %v3586_v28 = vld [vmem:[%s4635_s1 + $0x260] sm:$0xff]   ;;  %v3591_v33 = vld [vmem:[%s4635_s1 + $0x2e8] sm:$0xff]  }
  0x1e   :  { %3182 = vmatprep.subr.bf16.mxu1 %v3527_v29  ;;  %v3587_v29 = vld [vmem:[%s4635_s1 + $0x2e0] sm:$0xff]   ;;  %v3593_v35 = vld [vmem:[%s4635_s1 + $0x2a8] sm:$0xff]   ;;  %v3595_v37 = vld [vmem:[%s4635_s1 + $0x2f0] sm:$0xff]  }
  0x1f   :  { %v3626_v6 = vld [vmem:[%s4635_s1 + $0x368] sm:$0xff]  }
  0x20   :  { %3161 = vmatpush3.bf16.msra.mxu0 %v3528_v30  ;;  %v3588_v30 = vld [vmem:[%s4635_s1 + $0x220] sm:$0xff]   ;;  %v3629_v9 = vld [vmem:[%s4635_s1 + $0x3a8] sm:$0xff]  }
  0x21   :  { %3183 = vmatpush3.bf16.msra.mxu1 %v3529_v31  ;;  %3190 = vmatprep.subr.bf16.mxu0 %v3534_v38  ;;  %v3589_v31 = vld [vmem:[%s4635_s1 + $0x2a0] sm:$0xff]   ;;  %v3596_v38 = vld [vmem:[%s4635_s1 + $0x230] sm:$0xff]  }
  0x22   :  { %3212 = vmatprep.subr.bf16.mxu1 %v3535_v39  ;;  %v3597_v39 = vld [vmem:[%s4635_s1 + $0x2b0] sm:$0xff]  }
  0x23   :  { %2231 = vmatmul.mubr.bf16.vlgmr.msra.gmra.mrb[0].mxu0 %v2858_v34  ;;  %v3592_v34 = vld [vmem:[%s4635_s1 + $0x228] sm:$0xff]  }
  0x24   :  { %2271 = vmatmul.mubr.bf16.vlgmr.msra.gmra.mrb[0].mxu1 %v2860_v36  ;;  %3191 = vmatpush3.bf16.msra.mxu0 %v3536_v40  ;;  %v3594_v36 = vld [vmem:[%s4635_s1 + $0x270] sm:$0xff]   ;;  %v3598_v40 = vld [vmem:[%s4635_s1 + $0x278] sm:$0xff]  }
  0x25   :  { %3213 = vmatpush3.bf16.msra.mxu1 %v3537_v41  ;;  %3192 = vmatprep.subr.bf16.mxu0 %v3538_v42  ;;  %v3599_v41 = vld [vmem:[%s4635_s1 + $0x2f8] sm:$0xff]  }
  0x26   :  { %3214 = vmatprep.subr.bf16.mxu1 %v3539_v43  ;;  %2310 = vmatprep.mubr.bf16.mxu0 %v2863_v8  ;;  %v3600_v42 = vld [vmem:[%s4635_s1 + $0x238] sm:$0xff]   ;;  %v3628_v8 = vld [vmem:[%s4635_s1 + $0x328] sm:$0xff]  }
  0x27   :  { %2350 = vmatprep.mubr.bf16.mxu1 %v2865_v11  ;;  %v3601_v43 = vld [vmem:[%s4635_s1 + $0x2b8] sm:$0xff]   ;;  %v3631_v11 = vld [vmem:[%s4635_s1 + $0x3f0] sm:$0xff]  }
  0x28   :  { %3193 = vmatpush3.bf16.msra.mxu0 %v3540_v44  ;;  %v19_v44 = vld [vmem:[%s4636_s0 + $0x20] sm:$0xff] }
  0x29   :  { %3215 = vmatpush3.bf16.msra.mxu1 %v3541_v45  ;;  %3194 = vmatprep.subr.bf16.mxu0 %v3542_v46  ;;  %v20_v45 = vld [vmem:[%s4636_s0 + $0x28] sm:$0xff]  ;;  %v2866_v46 = vcombine.low %v19_v44, %v19_v44 }
  0x2a   :  { %3216 = vmatprep.subr.bf16.mxu1 %v3543_v47  ;;  %v2867_v47 = vcombine.high %v19_v44, %v19_v44  ;;  %v3662_v44 = vld [vmem:[%s4635_s1 + $0x468] sm:$0xff]  }
  0x2c   :  { %3195 = vmatpush3.bf16.msra.mxu0 %v3544_v48  ;;  %v2868_v48 = vcombine.low %v20_v45, %v20_v45 }
  0x2d   :  { %3217 = vmatpush3.bf16.msra.mxu1 %v3545_v49  ;;  %3196 = vmatprep.subr.bf16.mxu0 %v3546_v50  ;;  %v2869_v49 = vcombine.high %v20_v45, %v20_v45  ;;  %v3606_v50 = vld [vmem:[%s4635_s1 + $0x340] sm:$0xff]   ;;  %v3663_v45 = vld [vmem:[%s4635_s1 + $0x4e8] sm:$0xff]  }
  0x2e   :  { %3218 = vmatprep.subr.bf16.mxu1 %v3547_v51  ;;  %v3607_v51 = vld [vmem:[%s4635_s1 + $0x3c0] sm:$0xff]  }
  0x30   :  { %3197 = vmatpush3.bf16.msra.mxu0 %v3548_v52  ;;  %v3608_v52 = vld [vmem:[%s4635_s1 + $0x300] sm:$0xff]  }
  0x31   :  { %3219 = vmatpush3.bf16.msra.mxu1 %v3549_v53  ;;  %3198 = vmatprep.subr.bf16.mxu0 %v3550_v54  ;;  %v3609_v53 = vld [vmem:[%s4635_s1 + $0x380] sm:$0xff]   ;;  %v3610_v54 = vld [vmem:[%s4635_s1 + $0x348] sm:$0xff]  }
  0x32   :  { %3220 = vmatprep.subr.bf16.mxu1 %v3551_v55  ;;  %v3611_v55 = vld [vmem:[%s4635_s1 + $0x3c8] sm:$0xff]  }
  0x34   :  { %3199 = vmatpush3.bf16.msra.mxu0 %v3552_v56  ;;  %v3612_v56 = vld [vmem:[%s4635_s1 + $0x308] sm:$0xff]  }
  0x35   :  { %3221 = vmatpush3.bf16.msra.mxu1 %v3553_v57  ;;  %3200 = vmatprep.subr.bf16.mxu0 %v3554_v58  ;;  %v3613_v57 = vld [vmem:[%s4635_s1 + $0x388] sm:$0xff]   ;;  %v3614_v58 = vld [vmem:[%s4635_s1 + $0x350] sm:$0xff]  }
  0x36   :  { %3222 = vmatprep.subr.bf16.mxu1 %v3555_v59  ;;  %v3615_v59 = vld [vmem:[%s4635_s1 + $0x3d0] sm:$0xff]  }
  0x38   :  { %3201 = vmatpush3.bf16.msra.mxu0 %v3556_v60  ;;  %v3616_v60 = vld [vmem:[%s4635_s1 + $0x310] sm:$0xff]  }
  0x39   :  { %3223 = vmatpush3.bf16.msra.mxu1 %v3557_v61  ;;  %3202 = vmatprep.subr.bf16.mxu0 %v3558_v62  ;;  %v3617_v61 = vld [vmem:[%s4635_s1 + $0x390] sm:$0xff]   ;;  %v3618_v62 = vld [vmem:[%s4635_s1 + $0x358] sm:$0xff]  }
  0x3a   :  { %3224 = vmatprep.subr.bf16.mxu1 %v3559_v63  ;;  %v3619_v63 = vld [vmem:[%s4635_s1 + $0x3d8] sm:$0xff]  }
  0x3c   :  { %3203 = vmatpush3.bf16.msra.mxu0 %v3560_v0  ;;  %v3620_v0 = vld [vmem:[%s4635_s1 + $0x318] sm:$0xff]  }
  0x3d   :  { %3225 = vmatpush3.bf16.msra.mxu1 %v3561_v1  ;;  %3204 = vmatprep.subr.bf16.mxu0 %v3562_v2  ;;  %v3621_v1 = vld [vmem:[%s4635_s1 + $0x398] sm:$0xff]   ;;  %v3622_v2 = vld [vmem:[%s4635_s1 + $0x360] sm:$0xff]  }
  0x3e   :  { %3226 = vmatprep.subr.bf16.mxu1 %v3563_v3  ;;  %v3623_v3 = vld [vmem:[%s4635_s1 + $0x3e0] sm:$0xff]  }
  0x40   :  { %3205 = vmatpush3.bf16.msra.mxu0 %v3564_v4  ;;  %v3624_v4 = vld [vmem:[%s4635_s1 + $0x320] sm:$0xff]  }
  0x41   :  { %3227 = vmatpush3.bf16.msra.mxu1 %v3565_v5  ;;  %3234 = vmatprep.subr.bf16.mxu0 %v3570_v12  ;;  %v3625_v5 = vld [vmem:[%s4635_s1 + $0x3a0] sm:$0xff]   ;;  %v3632_v12 = vld [vmem:[%s4635_s1 + $0x330] sm:$0xff]  }
  0x42   :  { %3256 = vmatprep.subr.bf16.mxu1 %v3571_v13  ;;  %v3633_v13 = vld [vmem:[%s4635_s1 + $0x3b0] sm:$0xff]  }
  0x43   :  { %2311 = vmatmul.mubr.bf16.vlgmr.msra.gmra.mrb[4].mxu0 %v2862_v7  ;;  %v3627_v7 = vld [vmem:[%s4635_s1 + $0x3e8] sm:$0xff]  }
  0x44   :  { %2351 = vmatmul.mubr.bf16.vlgmr.msra.gmra.mrb[4].mxu1 %v2864_v10  ;;  %3235 = vmatpush3.bf16.msra.mxu0 %v3572_v14  ;;  %v3630_v10 = vld [vmem:[%s4635_s1 + $0x370] sm:$0xff]   ;;  %v3634_v14 = vld [vmem:[%s4635_s1 + $0x378] sm:$0xff]  }
  0x45   :  { %3257 = vmatpush3.bf16.msra.mxu1 %v3573_v15  ;;  %3236 = vmatprep.subr.bf16.mxu0 %v3574_v16  ;;  %v3635_v15 = vld [vmem:[%s4635_s1 + $0x3f8] sm:$0xff]  }
  0x46   :  { %3258 = vmatprep.subr.bf16.mxu1 %v3575_v17  ;;  %2390 = vmatprep.mubr.bf16.mxu0 %v2867_v47  ;;  %v3636_v16 = vld [vmem:[%s4635_s1 + $0x338] sm:$0xff]   ;;  %v3665_v47 = vld [vmem:[%s4635_s1 + $0x4a8] sm:$0xff]  }
  0x47   :  { %2430 = vmatprep.mubr.bf16.mxu1 %v2869_v49  ;;  %v3637_v17 = vld [vmem:[%s4635_s1 + $0x3b8] sm:$0xff]   ;;  %v3667_v49 = vld [vmem:[%s4635_s1 + $0x4f0] sm:$0xff]  }
  0x48   :  { %3237 = vmatpush3.bf16.msra.mxu0 %v3576_v18  ;;  %v21_v18 = vld [vmem:[%s4636_s0 + $0x30] sm:$0xff] }
  0x49   :  { %3259 = vmatpush3.bf16.msra.mxu1 %v3577_v19  ;;  %3238 = vmatprep.subr.bf16.mxu0 %v3578_v20  ;;  %v22_v19 = vld [vmem:[%s4636_s0 + $0x38] sm:$0xff]  ;;  %v2870_v20 = vcombine.low %v21_v18, %v21_v18 }
  0x4a   :  { %3260 = vmatprep.subr.bf16.mxu1 %v3579_v21  ;;  %v2871_v21 = vcombine.high %v21_v18, %v21_v18  ;;  %v3698_v18 = vld [vmem:[%s4635_s1 + $0x568] sm:$0xff]  }
  0x4c   :  { %3239 = vmatpush3.bf16.msra.mxu0 %v3580_v22  ;;  %v2872_v22 = vcombine.low %v22_v19, %v22_v19 }
  0x4d   :  { %3261 = vmatpush3.bf16.msra.mxu1 %v3581_v23  ;;  %3240 = vmatprep.subr.bf16.mxu0 %v3582_v24  ;;  %v3642_v23 = vld [vmem:[%s4635_s1 + $0x440] sm:$0xff]   ;;  %v2873_v24 = vcombine.high %v22_v19, %v22_v19  ;;  %v3699_v19 = vld [vmem:[%s4635_s1 + $0x5e8] sm:$0xff]  }
  0x4e   :  { %3262 = vmatprep.subr.bf16.mxu1 %v3583_v25  ;;  %v3643_v25 = vld [vmem:[%s4635_s1 + $0x4c0] sm:$0xff]  }
  0x50   :  { %3241 = vmatpush3.bf16.msra.mxu0 %v3584_v26  ;;  %v3644_v26 = vld [vmem:[%s4635_s1 + $0x400] sm:$0xff]  }
  0x51   :  { %3263 = vmatpush3.bf16.msra.mxu1 %v3585_v27  ;;  %3242 = vmatprep.subr.bf16.mxu0 %v3586_v28  ;;  %v3645_v27 = vld [vmem:[%s4635_s1 + $0x480] sm:$0xff]   ;;  %v3646_v28 = vld [vmem:[%s4635_s1 + $0x448] sm:$0xff]  }
  0x52   :  { %3264 = vmatprep.subr.bf16.mxu1 %v3587_v29  ;;  %v3647_v29 = vld [vmem:[%s4635_s1 + $0x4c8] sm:$0xff]  }
  0x54   :  { %3243 = vmatpush3.bf16.msra.mxu0 %v3588_v30  ;;  %v3648_v30 = vld [vmem:[%s4635_s1 + $0x408] sm:$0xff]  }
  0x55   :  { %3265 = vmatpush3.bf16.msra.mxu1 %v3589_v31  ;;  %3244 = vmatprep.subr.bf16.mxu0 %v3590_v32  ;;  %v3649_v31 = vld [vmem:[%s4635_s1 + $0x488] sm:$0xff]   ;;  %v3650_v32 = vld [vmem:[%s4635_s1 + $0x450] sm:$0xff]  }
  0x56   :  { %3266 = vmatprep.subr.bf16.mxu1 %v3591_v33  ;;  %v3651_v33 = vld [vmem:[%s4635_s1 + $0x4d0] sm:$0xff]  }
  0x58   :  { %3245 = vmatpush3.bf16.msra.mxu0 %v3592_v34  ;;  %v3652_v34 = vld [vmem:[%s4635_s1 + $0x410] sm:$0xff]  }
  0x59   :  { %3267 = vmatpush3.bf16.msra.mxu1 %v3593_v35  ;;  %3246 = vmatprep.subr.bf16.mxu0 %v3594_v36  ;;  %v3653_v35 = vld [vmem:[%s4635_s1 + $0x490] sm:$0xff]   ;;  %v3654_v36 = vld [vmem:[%s4635_s1 + $0x458] sm:$0xff]  }
  0x5a   :  { %3268 = vmatprep.subr.bf16.mxu1 %v3595_v37  ;;  %v3655_v37 = vld [vmem:[%s4635_s1 + $0x4d8] sm:$0xff]  }
  0x5c   :  { %3247 = vmatpush3.bf16.msra.mxu0 %v3596_v38  ;;  %v3656_v38 = vld [vmem:[%s4635_s1 + $0x418] sm:$0xff]  }
  0x5d   :  { %3269 = vmatpush3.bf16.msra.mxu1 %v3597_v39  ;;  %3248 = vmatprep.subr.bf16.mxu0 %v3598_v40  ;;  %v3657_v39 = vld [vmem:[%s4635_s1 + $0x498] sm:$0xff]   ;;  %v3658_v40 = vld [vmem:[%s4635_s1 + $0x460] sm:$0xff]  }
  0x5e   :  { %3270 = vmatprep.subr.bf16.mxu1 %v3599_v41  ;;  %v3659_v41 = vld [vmem:[%s4635_s1 + $0x4e0] sm:$0xff]  }
  0x60   :  { %3249 = vmatpush3.bf16.msra.mxu0 %v3600_v42  ;;  %v3660_v42 = vld [vmem:[%s4635_s1 + $0x420] sm:$0xff]  }
  0x61   :  { %3271 = vmatpush3.bf16.msra.mxu1 %v3601_v43  ;;  %3278 = vmatprep.subr.bf16.mxu0 %v3606_v50  ;;  %v3661_v43 = vld [vmem:[%s4635_s1 + $0x4a0] sm:$0xff]   ;;  %v3668_v50 = vld [vmem:[%s4635_s1 + $0x430] sm:$0xff]  }
  0x62   :  { %3300 = vmatprep.subr.bf16.mxu1 %v3607_v51  ;;  %v3669_v51 = vld [vmem:[%s4635_s1 + $0x4b0] sm:$0xff]  }
  0x63   :  { %2391 = vmatmul.mubr.bf16.vlgmr.msra.gmra.mrb[8].mxu0 %v2866_v46  ;;  %v3664_v46 = vld [vmem:[%s4635_s1 + $0x428] sm:$0xff]  }
  0x64   :  { %2431 = vmatmul.mubr.bf16.vlgmr.msra.gmra.mrb[8].mxu1 %v2868_v48  ;;  %3279 = vmatpush3.bf16.msra.mxu0 %v3608_v52  ;;  %v3666_v48 = vld [vmem:[%s4635_s1 + $0x470] sm:$0xff]   ;;  %v3670_v52 = vld [vmem:[%s4635_s1 + $0x478] sm:$0xff]  }
  0x65   :  { %3301 = vmatpush3.bf16.msra.mxu1 %v3609_v53  ;;  %3280 = vmatprep.subr.bf16.mxu0 %v3610_v54  ;;  %v3671_v53 = vld [vmem:[%s4635_s1 + $0x4f8] sm:$0xff]  }
  0x66   :  { %3302 = vmatprep.subr.bf16.mxu1 %v3611_v55  ;;  %2470 = vmatprep.mubr.bf16.mxu0 %v2871_v21  ;;  %v3672_v54 = vld [vmem:[%s4635_s1 + $0x438] sm:$0xff]   ;;  %v3701_v21 = vld [vmem:[%s4635_s1 + $0x5a8] sm:$0xff]  }
  0x67   :  { %2510 = vmatprep.mubr.bf16.mxu1 %v2873_v24  ;;  %v3673_v55 = vld [vmem:[%s4635_s1 + $0x4b8] sm:$0xff]   ;;  %v3704_v24 = vld [vmem:[%s4635_s1 + $0x530] sm:$0xff]  }
  0x68   :  { %3281 = vmatpush3.bf16.msra.mxu0 %v3612_v56  ;;  %v23_v56 = vld [vmem:[%s4636_s0 + $0x40] sm:$0xff] }
  0x69   :  { %3303 = vmatpush3.bf16.msra.mxu1 %v3613_v57  ;;  %3282 = vmatprep.subr.bf16.mxu0 %v3614_v58  ;;  %v2874_v57 = vcombine.low %v23_v56, %v23_v56  ;;  %v2875_v58 = vcombine.high %v23_v56, %v23_v56  ;;  %v3734_v56 = vld [vmem:[%s4635_s1 + $0x668] sm:$0xff]  }
  0x6a   :  { %3304 = vmatprep.subr.bf16.mxu1 %v3615_v59  ;;  %v24_v59 = vld [vmem:[%s4636_s0 + $0x48] sm:$0xff] }
  0x6c   :  { %3283 = vmatpush3.bf16.msra.mxu0 %v3616_v60  ;;  %v2876_v60 = vcombine.low %v24_v59, %v24_v59 }
  0x6d   :  { %3305 = vmatpush3.bf16.msra.mxu1 %v3617_v61  ;;  %3284 = vmatprep.subr.bf16.mxu0 %v3618_v62  ;;  %v2877_v61 = vcombine.high %v24_v59, %v24_v59  ;;  %v3678_v62 = vld [vmem:[%s4635_s1 + $0x540] sm:$0xff]   ;;  %v3737_v59 = vld [vmem:[%s4635_s1 + $0x6a8] sm:$0xff]  }
  0x6e   :  { %3306 = vmatprep.subr.bf16.mxu1 %v3619_v63  ;;  %v3679_v63 = vld [vmem:[%s4635_s1 + $0x5c0] sm:$0xff]  }
  0x70   :  { %3285 = vmatpush3.bf16.msra.mxu0 %v3620_v0  ;;  %v3680_v0 = vld [vmem:[%s4635_s1 + $0x500] sm:$0xff]  }
  0x71   :  { %3307 = vmatpush3.bf16.msra.mxu1 %v3621_v1  ;;  %3286 = vmatprep.subr.bf16.mxu0 %v3622_v2  ;;  %v3681_v1 = vld [vmem:[%s4635_s1 + $0x580] sm:$0xff]   ;;  %v3682_v2 = vld [vmem:[%s4635_s1 + $0x548] sm:$0xff]  }
  0x72   :  { %3308 = vmatprep.subr.bf16.mxu1 %v3623_v3  ;;  %v3683_v3 = vld [vmem:[%s4635_s1 + $0x5c8] sm:$0xff]  }
  0x74   :  { %3287 = vmatpush3.bf16.msra.mxu0 %v3624_v4  ;;  %v3684_v4 = vld [vmem:[%s4635_s1 + $0x508] sm:$0xff]  }
  0x75   :  { %3309 = vmatpush3.bf16.msra.mxu1 %v3625_v5  ;;  %3288 = vmatprep.subr.bf16.mxu0 %v3626_v6  ;;  %v3685_v5 = vld [vmem:[%s4635_s1 + $0x588] sm:$0xff]   ;;  %v3686_v6 = vld [vmem:[%s4635_s1 + $0x550] sm:$0xff]  }
  0x76   :  { %3310 = vmatprep.subr.bf16.mxu1 %v3627_v7  ;;  %v3687_v7 = vld [vmem:[%s4635_s1 + $0x5d0] sm:$0xff]  }
  0x78   :  { %3289 = vmatpush3.bf16.msra.mxu0 %v3628_v8  ;;  %v3688_v8 = vld [vmem:[%s4635_s1 + $0x510] sm:$0xff]  }
  0x79   :  { %3311 = vmatpush3.bf16.msra.mxu1 %v3629_v9  ;;  %3290 = vmatprep.subr.bf16.mxu0 %v3630_v10  ;;  %v3689_v9 = vld [vmem:[%s4635_s1 + $0x590] sm:$0xff]   ;;  %v3690_v10 = vld [vmem:[%s4635_s1 + $0x558] sm:$0xff]  }
  0x7a   :  { %3312 = vmatprep.subr.bf16.mxu1 %v3631_v11  ;;  %v3691_v11 = vld [vmem:[%s4635_s1 + $0x5d8] sm:$0xff]  }
  0x7c   :  { %3291 = vmatpush3.bf16.msra.mxu0 %v3632_v12  ;;  %v3692_v12 = vld [vmem:[%s4635_s1 + $0x518] sm:$0xff]  }
  0x7d   :  { %3313 = vmatpush3.bf16.msra.mxu1 %v3633_v13  ;;  %3292 = vmatprep.subr.bf16.mxu0 %v3634_v14  ;;  %v3693_v13 = vld [vmem:[%s4635_s1 + $0x598] sm:$0xff]   ;;  %v3694_v14 = vld [vmem:[%s4635_s1 + $0x560] sm:$0xff]  }
  0x7e   :  { %3314 = vmatprep.subr.bf16.mxu1 %v3635_v15  ;;  %v3695_v15 = vld [vmem:[%s4635_s1 + $0x5e0] sm:$0xff]  }
  0x80   :  { %3293 = vmatpush3.bf16.msra.mxu0 %v3636_v16  ;;  %v3696_v16 = vld [vmem:[%s4635_s1 + $0x520] sm:$0xff]  }
  0x81   :  { %3315 = vmatpush3.bf16.msra.mxu1 %v3637_v17  ;;  %3322 = vmatprep.subr.bf16.mxu0 %v3642_v23  ;;  %v3697_v17 = vld [vmem:[%s4635_s1 + $0x5a0] sm:$0xff]   ;;  %v3703_v23 = vld [vmem:[%s4635_s1 + $0x5f0] sm:$0xff]  }
  0x82   :  { %3344 = vmatprep.subr.bf16.mxu1 %v3643_v25  ;;  %v3705_v25 = vld [vmem:[%s4635_s1 + $0x5b0] sm:$0xff]  }
  0x83   :  { %2471 = vmatmul.mubr.bf16.vlgmr.msra.gmra.mrb[12].mxu0 %v2870_v20  ;;  %v3700_v20 = vld [vmem:[%s4635_s1 + $0x528] sm:$0xff]  }
  0x84   :  { %2511 = vmatmul.mubr.bf16.vlgmr.msra.gmra.mrb[12].mxu1 %v2872_v22  ;;  %3323 = vmatpush3.bf16.msra.mxu0 %v3644_v26  ;;  %v3702_v22 = vld [vmem:[%s4635_s1 + $0x570] sm:$0xff]   ;;  %v3706_v26 = vld [vmem:[%s4635_s1 + $0x578] sm:$0xff]  }
  0x85   :  { %3345 = vmatpush3.bf16.msra.mxu1 %v3645_v27  ;;  %3324 = vmatprep.subr.bf16.mxu0 %v3646_v28  ;;  %v3707_v27 = vld [vmem:[%s4635_s1 + $0x5f8] sm:$0xff]  }
  0x86   :  { %3346 = vmatprep.subr.bf16.mxu1 %v3647_v29  ;;  %2550 = vmatprep.mubr.bf16.mxu0 %v2875_v58  ;;  %v3708_v28 = vld [vmem:[%s4635_s1 + $0x538] sm:$0xff]   ;;  %v3736_v58 = vld [vmem:[%s4635_s1 + $0x628] sm:$0xff]  }
  0x87   :  { %2590 = vmatprep.mubr.bf16.mxu1 %v2877_v61  ;;  %v3709_v29 = vld [vmem:[%s4635_s1 + $0x5b8] sm:$0xff]   ;;  %v3739_v61 = vld [vmem:[%s4635_s1 + $0x6f0] sm:$0xff]  }
  0x88   :  { %3325 = vmatpush3.bf16.msra.mxu0 %v3648_v30  ;;  %v25_v30 = vld [vmem:[%s4636_s0 + $0x50] sm:$0xff] }
  0x89   :  { %3347 = vmatpush3.bf16.msra.mxu1 %v3649_v31  ;;  %3326 = vmatprep.subr.bf16.mxu0 %v3650_v32  ;;  %v26_v31 = vld [vmem:[%s4636_s0 + $0x58] sm:$0xff]  ;;  %v2878_v32 = vcombine.low %v25_v30, %v25_v30 }
  0x8a   :  { %3348 = vmatprep.subr.bf16.mxu1 %v3651_v33  ;;  %v2879_v33 = vcombine.high %v25_v30, %v25_v30  ;;  %v3769_v30 = vld [vmem:[%s4635_s1 + $0x7a0] sm:$0xff]  }
  0x8c   :  { %3327 = vmatpush3.bf16.msra.mxu0 %v3652_v34  ;;  %v2880_v34 = vcombine.low %v26_v31, %v26_v31 }
  0x8d   :  { %3349 = vmatpush3.bf16.msra.mxu1 %v3653_v35  ;;  %3328 = vmatprep.subr.bf16.mxu0 %v3654_v36  ;;  %v2881_v35 = vcombine.high %v26_v31, %v26_v31  ;;  %v3714_v36 = vld [vmem:[%s4635_s1 + $0x640] sm:$0xff]  }
  0x8e   :  { %3350 = vmatprep.subr.bf16.mxu1 %v3655_v37  ;;  %v3715_v37 = vld [vmem:[%s4635_s1 + $0x6c0] sm:$0xff]  }
  0x90   :  { %3329 = vmatpush3.bf16.msra.mxu0 %v3656_v38  ;;  %v3716_v38 = vld [vmem:[%s4635_s1 + $0x600] sm:$0xff]  }
  0x91   :  { %3351 = vmatpush3.bf16.msra.mxu1 %v3657_v39  ;;  %3330 = vmatprep.subr.bf16.mxu0 %v3658_v40  ;;  %v3717_v39 = vld [vmem:[%s4635_s1 + $0x680] sm:$0xff]   ;;  %v3718_v40 = vld [vmem:[%s4635_s1 + $0x648] sm:$0xff]  }
  0x92   :  { %3352 = vmatprep.subr.bf16.mxu1 %v3659_v41  ;;  %v3719_v41 = vld [vmem:[%s4635_s1 + $0x6c8] sm:$0xff]  }
  0x94   :  { %3331 = vmatpush3.bf16.msra.mxu0 %v3660_v42  ;;  %v3720_v42 = vld [vmem:[%s4635_s1 + $0x608] sm:$0xff]  }
  0x95   :  { %3353 = vmatpush3.bf16.msra.mxu1 %v3661_v43  ;;  %3332 = vmatprep.subr.bf16.mxu0 %v3662_v44  ;;  %v3721_v43 = vld [vmem:[%s4635_s1 + $0x688] sm:$0xff]   ;;  %v3722_v44 = vld [vmem:[%s4635_s1 + $0x650] sm:$0xff]  }
  0x96   :  { %3354 = vmatprep.subr.bf16.mxu1 %v3663_v45  ;;  %v3723_v45 = vld [vmem:[%s4635_s1 + $0x6d0] sm:$0xff]  }
  0x98   :  { %3333 = vmatpush3.bf16.msra.mxu0 %v3664_v46  ;;  %v3724_v46 = vld [vmem:[%s4635_s1 + $0x610] sm:$0xff]  }
  0x99   :  { %3355 = vmatpush3.bf16.msra.mxu1 %v3665_v47  ;;  %3334 = vmatprep.subr.bf16.mxu0 %v3666_v48  ;;  %v3725_v47 = vld [vmem:[%s4635_s1 + $0x690] sm:$0xff]   ;;  %v3726_v48 = vld [vmem:[%s4635_s1 + $0x658] sm:$0xff]  }
  0x9a   :  { %3356 = vmatprep.subr.bf16.mxu1 %v3667_v49  ;;  %v3727_v49 = vld [vmem:[%s4635_s1 + $0x6d8] sm:$0xff]  }
  0x9c   :  { %3335 = vmatpush3.bf16.msra.mxu0 %v3668_v50  ;;  %v3728_v50 = vld [vmem:[%s4635_s1 + $0x618] sm:$0xff]  }
  0x9d   :  { %3357 = vmatpush3.bf16.msra.mxu1 %v3669_v51  ;;  %3336 = vmatprep.subr.bf16.mxu0 %v3670_v52  ;;  %v3729_v51 = vld [vmem:[%s4635_s1 + $0x698] sm:$0xff]   ;;  %v3730_v52 = vld [vmem:[%s4635_s1 + $0x660] sm:$0xff]  }
  0x9e   :  { %3358 = vmatprep.subr.bf16.mxu1 %v3671_v53  ;;  %v3731_v53 = vld [vmem:[%s4635_s1 + $0x6e0] sm:$0xff]  }
  0xa0   :  { %3337 = vmatpush3.bf16.msra.mxu0 %v3672_v54  ;;  %v3732_v54 = vld [vmem:[%s4635_s1 + $0x620] sm:$0xff]  }
  0xa1   :  { %3359 = vmatpush3.bf16.msra.mxu1 %v3673_v55  ;;  %3366 = vmatprep.subr.bf16.mxu0 %v3678_v62  ;;  %v3733_v55 = vld [vmem:[%s4635_s1 + $0x6a0] sm:$0xff]   ;;  %v3740_v62 = vld [vmem:[%s4635_s1 + $0x630] sm:$0xff]  }
  0xa2   :  { %3388 = vmatprep.subr.bf16.mxu1 %v3679_v63  ;;  %v3741_v63 = vld [vmem:[%s4635_s1 + $0x6b0] sm:$0xff]  }
  0xa3   :  { %2551 = vmatmul.mubr.bf16.vlgmr.msra.gmra.mrb[16].mxu0 %v2874_v57  ;;  %v3735_v57 = vld [vmem:[%s4635_s1 + $0x6e8] sm:$0xff]  }
  0xa4   :  { %2591 = vmatmul.mubr.bf16.vlgmr.msra.gmra.mrb[16].mxu1 %v2876_v60  ;;  %3367 = vmatpush3.bf16.msra.mxu0 %v3680_v0  ;;  %v3738_v60 = vld [vmem:[%s4635_s1 + $0x670] sm:$0xff]   ;;  %v3742_v0 = vld [vmem:[%s4635_s1 + $0x678] sm:$0xff]  }
  0xa5   :  { %3389 = vmatpush3.bf16.msra.mxu1 %v3681_v1  ;;  %3368 = vmatprep.subr.bf16.mxu0 %v3682_v2  ;;  %v3743_v1 = vld [vmem:[%s4635_s1 + $0x6f8] sm:$0xff]  }
  0xa6   :  { %3390 = vmatprep.subr.bf16.mxu1 %v3683_v3  ;;  %2630 = vmatprep.mubr.bf16.mxu0 %v2879_v33  ;;  %v3744_v2 = vld [vmem:[%s4635_s1 + $0x638] sm:$0xff]  }
  0xa7   :  { %2670 = vmatprep.mubr.bf16.mxu1 %v2881_v35  ;;  %v3745_v3 = vld [vmem:[%s4635_s1 + $0x6b8] sm:$0xff]  }
  0xa8   :  { %3369 = vmatpush3.bf16.msra.mxu0 %v3684_v4  ;;  %v27_v4 = vld [vmem:[%s4636_s0 + $0x60] sm:$0xff] }
  0xa9   :  { %3391 = vmatpush3.bf16.msra.mxu1 %v3685_v5  ;;  %3370 = vmatprep.subr.bf16.mxu0 %v3686_v6  ;;  %v28_v5 = vld [vmem:[%s4636_s0 + $0x68] sm:$0xff]  ;;  %v2882_v6 = vcombine.low %v27_v4, %v27_v4 }
  0xaa   :  { %3392 = vmatprep.subr.bf16.mxu1 %v3687_v7  ;;  %v2883_v7 = vcombine.high %v27_v4, %v27_v4 }
  0xac   :  { %3371 = vmatpush3.bf16.msra.mxu0 %v3688_v8  ;;  %v2884_v8 = vcombine.low %v28_v5, %v28_v5 }
  0xad   :  { %3393 = vmatpush3.bf16.msra.mxu1 %v3689_v9  ;;  %3372 = vmatprep.subr.bf16.mxu0 %v3690_v10  ;;  %v3750_v9 = vld [vmem:[%s4635_s1 + $0x740] sm:$0xff]   ;;  %v2885_v10 = vcombine.high %v28_v5, %v28_v5 }
  0xae   :  { %3394 = vmatprep.subr.bf16.mxu1 %v3691_v11  ;;  %v3751_v11 = vld [vmem:[%s4635_s1 + $0x7c0] sm:$0xff]  }
  0xb0   :  { %3373 = vmatpush3.bf16.msra.mxu0 %v3692_v12  ;;  %v3752_v12 = vld [vmem:[%s4635_s1 + $0x700] sm:$0xff]  }
  0xb1   :  { %3395 = vmatpush3.bf16.msra.mxu1 %v3693_v13  ;;  %3374 = vmatprep.subr.bf16.mxu0 %v3694_v14  ;;  %v3753_v13 = vld [vmem:[%s4635_s1 + $0x780] sm:$0xff]   ;;  %v3754_v14 = vld [vmem:[%s4635_s1 + $0x748] sm:$0xff]  }
  0xb2   :  { %3396 = vmatprep.subr.bf16.mxu1 %v3695_v15  ;;  %v3755_v15 = vld [vmem:[%s4635_s1 + $0x7c8] sm:$0xff]  }
  0xb4   :  { %3375 = vmatpush3.bf16.msra.mxu0 %v3696_v16  ;;  %v3756_v16 = vld [vmem:[%s4635_s1 + $0x708] sm:$0xff]  }
  0xb5   :  { %3397 = vmatpush3.bf16.msra.mxu1 %v3697_v17  ;;  %3376 = vmatprep.subr.bf16.mxu0 %v3698_v18  ;;  %v3757_v17 = vld [vmem:[%s4635_s1 + $0x788] sm:$0xff]   ;;  %v3758_v18 = vld [vmem:[%s4635_s1 + $0x750] sm:$0xff]  }
  0xb6   :  { %3398 = vmatprep.subr.bf16.mxu1 %v3699_v19  ;;  %v3759_v19 = vld [vmem:[%s4635_s1 + $0x7d0] sm:$0xff]  }
  0xb8   :  { %3377 = vmatpush3.bf16.msra.mxu0 %v3700_v20  ;;  %v3760_v20 = vld [vmem:[%s4635_s1 + $0x710] sm:$0xff]  }
  0xb9   :  { %3399 = vmatpush3.bf16.msra.mxu1 %v3701_v21  ;;  %3378 = vmatprep.subr.bf16.mxu0 %v3702_v22  ;;  %v3761_v21 = vld [vmem:[%s4635_s1 + $0x790] sm:$0xff]   ;;  %v3762_v22 = vld [vmem:[%s4635_s1 + $0x758] sm:$0xff]  }
  0xba   :  { %3400 = vmatprep.subr.bf16.mxu1 %v3703_v23  ;;  %v3763_v23 = vld [vmem:[%s4635_s1 + $0x7d8] sm:$0xff]  }
  0xbc   :  { %3379 = vmatpush3.bf16.msra.mxu0 %v3704_v24  ;;  %v3764_v24 = vld [vmem:[%s4635_s1 + $0x718] sm:$0xff]  }
  0xbd   :  { %3401 = vmatpush3.bf16.msra.mxu1 %v3705_v25  ;;  %3380 = vmatprep.subr.bf16.mxu0 %v3706_v26  ;;  %v3765_v25 = vld [vmem:[%s4635_s1 + $0x798] sm:$0xff]   ;;  %v3766_v26 = vld [vmem:[%s4635_s1 + $0x760] sm:$0xff]  }
  0xbe   :  { %3402 = vmatprep.subr.bf16.mxu1 %v3707_v27  ;;  %v3767_v27 = vld [vmem:[%s4635_s1 + $0x7e0] sm:$0xff]  }
  0xc0   :  { %3381 = vmatpush3.bf16.msra.mxu0 %v3708_v28  ;;  %v3768_v28 = vld [vmem:[%s4635_s1 + $0x720] sm:$0xff]  }
  0xc1   :  { %3403 = vmatpush3.bf16.msra.mxu1 %v3709_v29  ;;  %3410 = vmatprep.subr.bf16.mxu0 %v3714_v36 }
  0xc2   :  { %3432 = vmatprep.subr.bf16.mxu1 %v3715_v37  ;;  %v3770_v37 = vld [vmem:[%s4635_s1 + $0x768] sm:$0xff]  }
  0xc3   :  { %2631 = vmatmul.mubr.bf16.vlgmr.msra.gmra.mrb[20].mxu0 %v2878_v32  ;;  %v2857_v32 = vld [vmem:[%s4637_s2] ss:$0 sm:$0xff] }
  0xc4   :  { %2671 = vmatmul.mubr.bf16.vlgmr.msra.gmra.mrb[20].mxu1 %v2880_v34  ;;  %3411 = vmatpush3.bf16.msra.mxu0 %v3716_v38 }
  0xc5   :  { %3433 = vmatpush3.bf16.msra.mxu1 %v3717_v39  ;;  %3412 = vmatprep.subr.bf16.mxu0 %v3718_v40  ;;  %v3771_v39 = vld [vmem:[%s4635_s1 + $0x7e8] sm:$0xff]  }
  0xc6   :  { %3434 = vmatprep.subr.bf16.mxu1 %v3719_v41  ;;  %2710 = vmatprep.mubr.bf16.mxu0 %v2883_v7 }
  0xc7   :  { %2750 = vmatprep.mubr.bf16.mxu1 %v2885_v10 }
  0xc8   :  { %3413 = vmatpush3.bf16.msra.mxu0 %v3720_v42  ;;  %v3772_v42 = vld [vmem:[%s4635_s1 + $0x728] sm:$0xff]  }
  0xc9   :  { %3435 = vmatpush3.bf16.msra.mxu1 %v3721_v43  ;;  %3414 = vmatprep.subr.bf16.mxu0 %v3722_v44  ;;  %v3773_v44 = vld [vmem:[%s4635_s1 + $0x7a8] sm:$0xff]  }
  0xca   :  { %3436 = vmatprep.subr.bf16.mxu1 %v3723_v45 }
  0xcc   :  { %3415 = vmatpush3.bf16.msra.mxu0 %v3724_v46 }
  0xcd   :  { %3437 = vmatpush3.bf16.msra.mxu1 %v3725_v47  ;;  %3416 = vmatprep.subr.bf16.mxu0 %v3726_v48  ;;  %v3774_v47 = vld [vmem:[%s4635_s1 + $0x770] sm:$0xff]  }
  0xce   :  { %3438 = vmatprep.subr.bf16.mxu1 %v3727_v49  ;;  %v3775_v48 = vld [vmem:[%s4635_s1 + $0x7f0] sm:$0xff]  }
  0xcf   :  { %v3776_v49 = vld [vmem:[%s4635_s1 + $0x730] sm:$0xff]  }
  0xd0   :  { %3417 = vmatpush3.bf16.msra.mxu0 %v3728_v50  ;;  %v3777_v50 = vld [vmem:[%s4635_s1 + $0x7b0] sm:$0xff]  }
  0xd1   :  { %3439 = vmatpush3.bf16.msra.mxu1 %v3729_v51  ;;  %3418 = vmatprep.subr.bf16.mxu0 %v3730_v52  ;;  %v3778_v51 = vld [vmem:[%s4635_s1 + $0x778] sm:$0xff]  }
  0xd2   :  { %3440 = vmatprep.subr.bf16.mxu1 %v3731_v53  ;;  %v3779_v52 = vld [vmem:[%s4635_s1 + $0x7f8] sm:$0xff]  }
  0xd3   :  { %v3780_v53 = vld [vmem:[%s4635_s1 + $0x738] sm:$0xff]  }
  0xd4   :  { %3419 = vmatpush3.bf16.msra.mxu0 %v3732_v54  ;;  %v3781_v54 = vld [vmem:[%s4635_s1 + $0x7b8] sm:$0xff]  }
  0xd5   :  { %3441 = vmatpush3.bf16.msra.mxu1 %v3733_v55  ;;  %3420 = vmatprep.subr.bf16.mxu0 %v3734_v56  ;;  %v29_v55 = vld [vmem:[%s4636_s0 + $0x70] sm:$0xff]  ;;  %v30_v56 = vld [vmem:[%s4636_s0 + $0x78] sm:$0xff] }
  0xd6   :  { %3442 = vmatprep.subr.bf16.mxu1 %v3735_v57  ;;  %v2886_v57 = vcombine.low %v29_v55, %v29_v55 }
  0xd8   :  { %3421 = vmatpush3.bf16.msra.mxu0 %v3736_v58  ;;  %v2887_v58 = vcombine.high %v29_v55, %v29_v55 }
  0xd9   :  { %3443 = vmatpush3.bf16.msra.mxu1 %v3737_v59  ;;  %3422 = vmatprep.subr.bf16.mxu0 %v3738_v60  ;;  %v2888_v59 = vcombine.low %v30_v56, %v30_v56  ;;  %v2889_v60 = vcombine.high %v30_v56, %v30_v56 }
  0xda   :  { %3444 = vmatprep.subr.bf16.mxu1 %v3739_v61 }
  0xdc   :  { %3423 = vmatpush3.bf16.msra.mxu0 %v3740_v62 }
  0xdd   :  { %3445 = vmatpush3.bf16.msra.mxu1 %v3741_v63  ;;  %3424 = vmatprep.subr.bf16.mxu0 %v3742_v0 }
  0xde   :  { %3446 = vmatprep.subr.bf16.mxu1 %v3743_v1 }
  0xe0   :  { %3425 = vmatpush3.bf16.msra.mxu0 %v3744_v2 }
  0xe1   :  { %3447 = vmatpush3.bf16.msra.mxu1 %v3745_v3  ;;  %3454 = vmatprep.subr.bf16.mxu0 %v3750_v9 }
  0xe2   :  { %3476 = vmatprep.subr.bf16.mxu1 %v3751_v11 }
  0xe3   :  { %2711 = vmatmul.mubr.bf16.vlgmr.msra.gmra.mrb[24].mxu0 %v2882_v6 }
  0xe4   :  { %2751 = vmatmul.mubr.bf16.vlgmr.msra.gmra.mrb[24].mxu1 %v2884_v8  ;;  %3455 = vmatpush3.bf16.msra.mxu0 %v3752_v12 }
  0xe5   :  { %3477 = vmatpush3.bf16.msra.mxu1 %v3753_v13  ;;  %3456 = vmatprep.subr.bf16.mxu0 %v3754_v14 }
  0xe6   :  { %3478 = vmatprep.subr.bf16.mxu1 %v3755_v15  ;;  %2790 = vmatprep.mubr.bf16.mxu0 %v2887_v58 }
  0xe7   :  { %2830 = vmatprep.mubr.bf16.mxu1 %v2889_v60 }
  0xe8   :  { %3457 = vmatpush3.bf16.msra.mxu0 %v3756_v16 }
  0xe9   :  { %3479 = vmatpush3.bf16.msra.mxu1 %v3757_v17  ;;  %3458 = vmatprep.subr.bf16.mxu0 %v3758_v18 }
  0xea   :  { %3480 = vmatprep.subr.bf16.mxu1 %v3759_v19 }
  0xec   :  { %3459 = vmatpush3.bf16.msra.mxu0 %v3760_v20 }
  0xed   :  { %3481 = vmatpush3.bf16.msra.mxu1 %v3761_v21  ;;  %3460 = vmatprep.subr.bf16.mxu0 %v3762_v22 }
  0xee   :  { %3482 = vmatprep.subr.bf16.mxu1 %v3763_v23 }
  0xf0   :  { %3461 = vmatpush3.bf16.msra.mxu0 %v3764_v24 }
  0xf1   :  { %3483 = vmatpush3.bf16.msra.mxu1 %v3765_v25  ;;  %3462 = vmatprep.subr.bf16.mxu0 %v3766_v26 }
  0xf2   :  { %3484 = vmatprep.subr.bf16.mxu1 %v3767_v27 }
  0xf4   :  { %3463 = vmatpush3.bf16.msra.mxu0 %v3768_v28 }
  0xf5   :  { %3485 = vmatpush3.bf16.msra.mxu1 %v3769_v30  ;;  %3464 = vmatprep.subr.bf16.mxu0 %v3770_v37 }
  0xf6   :  { %v3162_v29 = vpop.f32.mrb[0].mxu0  ;;  %3486 = vmatprep.subr.bf16.mxu1 %v3771_v39 }
  0xf7   :  { %v3184_v31 = vpop.f32.mrb[0].mxu1  ;;  %v3163_v33 = vpop.f32.mrb[1].mxu0 }
  0xf8   :  { %v3185_v34 = vpop.f32.mrb[1].mxu1  ;;  %v3164_v35 = vadd.f32 %v3163_v33, %v3162_v29  ;;  %v3165_v38 = vpop.f32.mrb[2].mxu0  ;;  %3465 = vmatpush3.bf16.msra.mxu0 %v3772_v42 }
  0xf9   :  { %v3186_v36 = vadd.f32 %v3185_v34, %v3184_v31  ;;  %v3187_v40 = vpop.f32.mrb[2].mxu1  ;;  %v3166_v43 = vpop.f32.mrb[3].mxu0  ;;  %3487 = vmatpush3.bf16.msra.mxu1 %v3773_v44  ;;  %3466 = vmatprep.subr.bf16.mxu0 %v3774_v47 }
  0xfa   :  { %v2233_v41 = vadd.f32 %v3164_v35, %v2857_v32  ;;  %v3188_v45 = vpop.f32.mrb[3].mxu1  ;;  %3488 = vmatprep.subr.bf16.mxu1 %v3775_v48 }
  0xfc   :  { %v2273_v46 = vadd.f32 %v3186_v36, %v2233_v41  ;;  %3467 = vmatpush3.bf16.msra.mxu0 %v3776_v49 }
  0xfd   :  { %3489 = vmatpush3.bf16.msra.mxu1 %v3777_v50  ;;  %3468 = vmatprep.subr.bf16.mxu0 %v3778_v51 }
  0xfe   :  { %3490 = vmatprep.subr.bf16.mxu1 %v3779_v52 }
 0x100   :  { %3469 = vmatpush3.bf16.msra.mxu0 %v3780_v53 }
 0x101   :  { %3491 = vmatpush3.bf16.msra.mxu1 %v3781_v54 }
 0x103   :  { %2791 = vmatmul.mubr.bf16.vlgmr.msra.gmra.mrb[28].mxu0 %v2886_v57 }
 0x104   :  { %2831 = vmatmul.mubr.bf16.vlgmr.msra.gmra.mrb[28].mxu1 %v2888_v59 }
 0x116   :  { %v3206_v61 = vpop.f32.mrb[4].mxu0 }
 0x117   :  { %v3228_v62 = vpop.f32.mrb[4].mxu1  ;;  %v3207_v63 = vpop.f32.mrb[5].mxu0 }
 0x118   :  { %v3229_v0 = vpop.f32.mrb[5].mxu1  ;;  %v3208_v1 = vadd.f32 %v3207_v63, %v3206_v61  ;;  %v3209_v3 = vpop.f32.mrb[6].mxu0 }
 0x119   :  { %v3230_v2 = vadd.f32 %v3229_v0, %v3228_v62  ;;  %v3231_v4 = vpop.f32.mrb[6].mxu1  ;;  %v3210_v5 = vpop.f32.mrb[7].mxu0 }
 0x11a   :  { %v3232_v6 = vpop.f32.mrb[7].mxu1  ;;  %v2313_v7 = vadd.f32 %v3208_v1, %v2273_v46 }
 0x11c   :  { %v2353_v8 = vadd.f32 %v3230_v2, %v2313_v7 }
 0x136   :  { %v3250_v9 = vpop.f32.mrb[8].mxu0 }
 0x137   :  { %v3272_v10 = vpop.f32.mrb[8].mxu1  ;;  %v3251_v11 = vpop.f32.mrb[9].mxu0 }
 0x138   :  { %v3252_v12 = vadd.f32 %v3251_v11, %v3250_v9  ;;  %v3273_v13 = vpop.f32.mrb[9].mxu1  ;;  %v3253_v14 = vpop.f32.mrb[10].mxu0 }
 0x139   :  { %v3274_v15 = vadd.f32 %v3273_v13, %v3272_v10  ;;  %v3275_v16 = vpop.f32.mrb[10].mxu1  ;;  %v3254_v17 = vpop.f32.mrb[11].mxu0 }
 0x13a   :  { %v2393_v18 = vadd.f32 %v3252_v12, %v2353_v8  ;;  %v3276_v19 = vpop.f32.mrb[11].mxu1 }
 0x13c   :  { %v2433_v20 = vadd.f32 %v3274_v15, %v2393_v18 }
 0x156   :  { %v3294_v21 = vpop.f32.mrb[12].mxu0 }
 0x157   :  { %v3316_v22 = vpop.f32.mrb[12].mxu1  ;;  %v3295_v23 = vpop.f32.mrb[13].mxu0 }
 0x158   :  { %v3296_v24 = vadd.f32 %v3295_v23, %v3294_v21  ;;  %v3317_v25 = vpop.f32.mrb[13].mxu1  ;;  %v3297_v26 = vpop.f32.mrb[14].mxu0 }
 0x159   :  { %v3318_v27 = vadd.f32 %v3317_v25, %v3316_v22  ;;  %v3319_v28 = vpop.f32.mrb[14].mxu1  ;;  %v3298_v29 = vpop.f32.mrb[15].mxu0 }
 0x15a   :  { %v2473_v30 = vadd.f32 %v3296_v24, %v2433_v20  ;;  %v3320_v31 = vpop.f32.mrb[15].mxu1 }
 0x15c   :  { %v2513_v32 = vadd.f32 %v3318_v27, %v2473_v30 }
 0x176   :  { %v3338_v33 = vpop.f32.mrb[16].mxu0 }
 0x177   :  { %v3360_v34 = vpop.f32.mrb[16].mxu1  ;;  %v3339_v35 = vpop.f32.mrb[17].mxu0 }
 0x178   :  { %v3361_v36 = vpop.f32.mrb[17].mxu1  ;;  %v3340_v37 = vadd.f32 %v3339_v35, %v3338_v33  ;;  %v3341_v39 = vpop.f32.mrb[18].mxu0 }
 0x179   :  { %v3362_v38 = vadd.f32 %v3361_v36, %v3360_v34  ;;  %v3363_v40 = vpop.f32.mrb[18].mxu1  ;;  %v3342_v41 = vpop.f32.mrb[19].mxu0 }
 0x17a   :  { %v3364_v42 = vpop.f32.mrb[19].mxu1  ;;  %v2553_v43 = vadd.f32 %v3340_v37, %v2513_v32 }
 0x17c   :  { %v2593_v44 = vadd.f32 %v3362_v38, %v2553_v43 }
 0x196   :  { %v3382_v45 = vpop.f32.mrb[20].mxu0 }
 0x197   :  { %v3404_v46 = vpop.f32.mrb[20].mxu1  ;;  %v3383_v47 = vpop.f32.mrb[21].mxu0 }
 0x198   :  { %v3384_v48 = vadd.f32 %v3383_v47, %v3382_v45  ;;  %v3405_v49 = vpop.f32.mrb[21].mxu1  ;;  %v3385_v50 = vpop.f32.mrb[22].mxu0 }
 0x199   :  { %v3406_v51 = vadd.f32 %v3405_v49, %v3404_v46  ;;  %v3407_v52 = vpop.f32.mrb[22].mxu1  ;;  %v3386_v53 = vpop.f32.mrb[23].mxu0 }
 0x19a   :  { %v2633_v54 = vadd.f32 %v3384_v48, %v2593_v44  ;;  %v3408_v55 = vpop.f32.mrb[23].mxu1 }
 0x19c   :  { %v2673_v56 = vadd.f32 %v3406_v51, %v2633_v54 }
 0x1b6   :  { %v3426_v57 = vpop.f32.mrb[24].mxu0 }
 0x1b7   :  { %v3448_v58 = vpop.f32.mrb[24].mxu1  ;;  %v3427_v59 = vpop.f32.mrb[25].mxu0 }
 0x1b8   :  { %v3428_v60 = vadd.f32 %v3427_v59, %v3426_v57  ;;  %v3449_v61 = vpop.f32.mrb[25].mxu1  ;;  %v3429_v62 = vpop.f32.mrb[26].mxu0 }
 0x1b9   :  { %v3450_v63 = vadd.f32 %v3449_v61, %v3448_v58  ;;  %v3451_v0 = vpop.f32.mrb[26].mxu1  ;;  %v3430_v1 = vpop.f32.mrb[27].mxu0 }
 0x1ba   :  { %v2713_v2 = vadd.f32 %v3428_v60, %v2673_v56  ;;  %v3452_v3 = vpop.f32.mrb[27].mxu1 }
 0x1bc   :  { %v2753_v4 = vadd.f32 %v3450_v63, %v2713_v2 }
 0x1d6   :  { %v3470_v5 = vpop.f32.mrb[28].mxu0 }
 0x1d7   :  { %v3492_v6 = vpop.f32.mrb[28].mxu1  ;;  %v3471_v7 = vpop.f32.mrb[29].mxu0 }
 0x1d8   :  { %v3472_v8 = vadd.f32 %v3471_v7, %v3470_v5  ;;  %v3493_v9 = vpop.f32.mrb[29].mxu1  ;;  %v3473_v10 = vpop.f32.mrb[30].mxu0 }
 0x1d9   :  { %v3494_v11 = vadd.f32 %v3493_v9, %v3492_v6  ;;  %v3495_v12 = vpop.f32.mrb[30].mxu1  ;;  %v3474_v13 = vpop.f32.mrb[31].mxu0 }
 0x1da   :  { %v2793_v14 = vadd.f32 %v3472_v8, %v2753_v4  ;;  %v3496_v15 = vpop.f32.mrb[31].mxu1 }
 0x1dc   :  { %v2833_v16 = vadd.f32 %v3494_v11, %v2793_v14 }
 0x1de   :  { %v2839_v17 = vsel %vm2838_vm0, %v2833_v16, -inf }
 0x1df   :  { %2840 = vmax.xlane.f32.xlu0 %v2839_v17 }
 0x26c   :  { %v2841_v18 = vpop.xlane.xlu0 %2840 }
 0x26d   :  { %v2842_v19 = vsub.f32 %v2833_v16, %v2841_v18 }
 0x26f   :  { %v2843_v20 = vmul.f32 1.442695, %v2842_v19 }
 0x271   :  { %3786 = vpow2.f32 %v2843_v20 }
 0x27b   :  { %v3787_v21 = vpop.eup %3786 }
 0x27c   :  { %v2845_v22 = vsel %vm2838_vm0, %v3787_v21, 0.0 }
 0x27d   :  { %2846 = vadd.xlane.f32.xlu0 %v2845_v22 }
 0x30a   :  { %v2847_v23 = vpop.xlane.xlu0 %2846 }
 0x30b   :  { %3788 = vlog2.f32 %v2847_v23 }
 0x315   :  { %v3789_v24 = vpop.eup %3788 }
 0x316   :  { %v2849_v25 = vmul.f32 0.6931472, %v3789_v24 }
 0x318   :  { %v2850_v26 = vadd.f32 %v2849_v25, %v2841_v18 }
 0x31a   :  { %v2851_v27 = vsub.f32 %v2833_v16, %v2850_v26 }
 0x31c   :  { %2852 = vst.msk [vmem:[%s4638_s3] sm:$0xff] %vm2838_vm0, %v2851_v27 }

</bundles_post_ra>
